<compile_context>
chip_gen: v7x
topology: tpu7x:2x2x1
jax: 0.10.0
libtpu: 0.0.40
codegen_flags: <defaults>
</compile_context>

<pallas_src>
import numpy as np
import jax
import jax.numpy as jnp
from jax.experimental import pallas as pl
from jax.experimental.pallas import tpu as pltpu

EPS = 1e-5  # PyTorch LayerNorm default


# ----------------------------- kernel-side ops ------------------------------
def _layer_norm(h, g, b):
    # h: (C, M) f32; g/b: (C, 1) f32.  LayerNorm over the channel (sublane) dim.
    mu = jnp.mean(h, axis=0, keepdims=True)
    var = jnp.mean(jnp.square(h - mu), axis=0, keepdims=True)
    return (h - mu) * jax.lax.rsqrt(var + EPS) * g + b


def _fill_tap_slab(slab_ref, h, l2):
    """Write the 9 shifted copies of h (Cin, M) into slab_ref (9*Cin, M).

    The shift is a static pltpu.roll (XLU lane rotation) of the flattened
    position axis; rolls wrap across image/batch boundaries but every wrapped
    lane is later zeroed by the stacked boundary mask, so images never mix."""
    cin, m = h.shape
    t = 0
    for dh in (-1, 0, 1):
        for dw in (-1, 0, 1):
            s = dh * l2 + dw                          # flattened neighbour offset
            rolled = h if s == 0 else pltpu.roll(h, (-s) % m, axis=1)
            slab_ref[pl.ds(t * cin, cin), :] = rolled
            t += 1


def _conv3x3(slab_ref, h, w, mask_ref, l2):
    """Fused 'same' 3x3 conv: taps stacked on sublanes, one K=9*Cin MXU matmul.

    h: (Cin, M) f32.  w: (Cout, 9*Cin) bf16.  mask_ref: (9*Cin, M) f32 0/1.
    Masking stays in f32 (v5e has no bf16 VPU); a single full-slab cast feeds
    the MXU with f32 accumulation."""
    _fill_tap_slab(slab_ref, h, l2)
    slab = slab_ref[...] * mask_ref[...]
    return jnp.dot(w, slab.astype(jnp.bfloat16),
                   preferred_element_type=jnp.float32)


def _make_kernel(num_layers, l2, num_labels):
    def kernel(x_ref, pmask_ref, bmask_ref, pw_ref, bw_ref, lng_ref, lnb_ref,
               ow_ref, ob_ref, o_ref, pslab_ref, bslab_ref):
        x = x_ref[...].astype(jnp.float32)                        # (hidden, M)
        h = _conv3x3(pslab_ref, x, pw_ref[...], pmask_ref, l2)    # self.proj (bias=False)
        h = jnp.maximum(_layer_norm(h, lng_ref[0], lnb_ref[0]), 0.0)   # norm + relu
        for l in range(num_layers):                               # BasicBlock stack
            y = _conv3x3(bslab_ref, h, bw_ref[2 * l], bmask_ref, l2)
            y = jnp.maximum(_layer_norm(y, lng_ref[2 * l + 1], lnb_ref[2 * l + 1]), 0.0)
            y = _conv3x3(bslab_ref, y, bw_ref[2 * l + 1], bmask_ref, l2)
            y = _layer_norm(y, lng_ref[2 * l + 2], lnb_ref[2 * l + 2])
            h = jnp.maximum(y + h, 0.0)                           # residual + ReLU (f32)
        if num_labels == 1:
            # self.output (Linear) as a VPU weighted row-sum: no full-slab bf16
            # cast and no 1-row MXU matmul in the kernel tail.
            logits = jnp.sum(h * ow_ref[...], axis=0, keepdims=True) + ob_ref[...]
        else:
            logits = jnp.dot(ow_ref[...], h.astype(jnp.bfloat16),
                             preferred_element_type=jnp.float32) + ob_ref[...]
        o_ref[...] = logits.astype(o_ref.dtype)
    return kernel


# ------------------------------ host-side glue ------------------------------
def _build_tap_masks(n_img, L1, L2):
    """(9, n_img*L1*L2) 0/1 masks for ONE tile of n_img whole images: tap
    t=(dh+1)*3+(dw+1) is valid where the neighbour (r+dh, c+dw) stays inside
    its own L1 x L2 image."""
    n = L1 * L2
    m = n_img * n
    p = np.arange(m) % n
    r, c = p // L2, p % L2
    masks = np.zeros((9, m), np.float32)
    t = 0
    for dh in (-1, 0, 1):
        for dw in (-1, 0, 1):
            ok = (r + dh >= 0) & (r + dh < L1) & (c + dw >= 0) & (c + dw < L2)
            masks[t, ok] = 1.0
            t += 1
    return masks


def _conv_weight(w):
    """(3,3,Cin,Cout) -> fused (Cout, 9*Cin) bf16; column index = (kh*3+kw)*Cin + cin."""
    cin, cout = w.shape[2], w.shape[3]
    return jnp.transpose(w, (3, 0, 1, 2)).reshape(cout, 9 * cin).astype(jnp.bfloat16)


def resnet_pallas(x, params, num_layers, num_labels, target_tile_lanes=4096):
    B, L1, L2, hidden = x.shape
    n = L1 * L2
    M = B * n
    C = params["proj_g"].shape[0]

    # Images per tile: largest divisor of B whose lane count fits the target and
    # keeps the lane axis a multiple of 128 (unless the tile is the whole batch,
    # in which case the block equals the full array and any M is legal).
    # TODO(synk): non-multiple-of-128 production shapes should additionally pad M
    # (with masked padded lanes) to keep stores lane-dense.
    ipt = B
    for d in range(B, 0, -1):
        if B % d == 0 and d * n <= target_tile_lanes and (d == B or (d * n) % 128 == 0):
            ipt = d
            break
    n_tiles = B // ipt
    tm = ipt * n

    # Boundary masks, pre-broadcast/stacked on the host (no in-kernel broadcasts).
    masks9 = _build_tap_masks(ipt, L1, L2)                       # (9, tm)
    pmask = jnp.asarray(np.repeat(masks9, hidden, axis=0))       # (9*hidden, tm) f32
    bmask = jnp.asarray(np.repeat(masks9, C, axis=0))            # (9*C, tm) f32

    # Activation slab: channels on sublanes, positions lane-dense, shipped bf16.
    xT = x.reshape(M, hidden).T.astype(jnp.bfloat16)             # (hidden, M)

    proj_w = _conv_weight(params["proj_w"])                      # (C, 9*hidden) bf16
    if num_layers > 0:
        blk_w = jnp.stack([_conv_weight(lp[k]) for lp in params["layers"]
                           for k in ("c1", "c2")])               # (2L, C, 9*C) bf16
    else:
        blk_w = jnp.zeros((1, C, 9 * C), jnp.bfloat16)           # unused dummy

    # Pack all LayerNorm affine params: index 0 = proj norm, 2l+1 / 2l+2 = block l.
    gammas = [params["proj_g"]] + [lp[k] for lp in params["layers"] for k in ("g1", "g2")]
    betas = [params["proj_b"]] + [lp[k] for lp in params["layers"] for k in ("b1", "b2")]
    ln_g = jnp.stack([g.reshape(C, 1) for g in gammas]).astype(jnp.float32)
    ln_b = jnp.stack([b.reshape(C, 1) for b in betas]).astype(jnp.float32)

    if num_labels == 1:
        out_w = params["out_w"].reshape(C, 1).astype(jnp.float32)     # VPU row-sum
    else:
        out_w = params["out_w"].T.astype(jnp.bfloat16)                # (labels, C) MXU
    out_b = params["out_b"].reshape(num_labels, 1).astype(jnp.float32)

    flat = [xT, pmask, bmask, proj_w, blk_w, ln_g, ln_b, out_w, out_b]

    def const_spec(a):   # index-invariant block: fetched once, never re-DMA'd
        return pl.BlockSpec(a.shape, lambda i, _nd=a.ndim: (0,) * _nd)

    in_specs = ([pl.BlockSpec((hidden, tm), lambda i: (0, i))]
                + [const_spec(a) for a in flat[1:]])
    out_spec = pl.BlockSpec((num_labels, tm), lambda i: (0, i))

    # Real conv/linear FLOPs for the fused-K matmuls.
    flops = 2 * M * (9 * hidden * C + num_layers * 2 * 9 * C * C + C * num_labels)
    transcendentals = M * (1 + 2 * num_layers)       # one rsqrt per LayerNorm column
    bytes_accessed = int(sum(int(a.size) * a.dtype.itemsize for a in flat)
                         + M * num_labels * x.dtype.itemsize)

    # VMEM budget: double-buffered activation/output blocks + resident constants
    # + the two tap-slab scratch buffers, with generous headroom.
    vmem_need = (2 * (hidden * tm * 2 + num_labels * tm * 4)
                 + sum(int(a.size) * a.dtype.itemsize for a in flat[1:])
                 + (9 * hidden + 9 * C) * tm * 4)
    vmem_limit = int(min(100 << 20, max(32 << 20, 2 * vmem_need + (8 << 20))))

    out = pl.pallas_call(
        _make_kernel(num_layers, L2, num_labels),
        out_shape=jax.ShapeDtypeStruct((num_labels, M), x.dtype),
        grid_spec=pltpu.PrefetchScalarGridSpec(
            num_scalar_prefetch=0, grid=(n_tiles,),
            in_specs=in_specs, out_specs=out_spec,
            scratch_shapes=[pltpu.VMEM((9 * hidden, tm), jnp.float32),   # proj tap slab
                            pltpu.VMEM((9 * C, tm), jnp.float32)]),      # block tap slab
        compiler_params=pltpu.CompilerParams(
            dimension_semantics=("parallel",),
            vmem_limit_bytes=vmem_limit),
        cost_estimate=pl.CostEstimate(flops=flops, transcendentals=transcendentals,
                                      bytes_accessed=bytes_accessed),
    )(*flat)
    return out.T.reshape(B, L1, L2, num_labels)


# --------------------------- pure-JAX reference -----------------------------
def _ref_conv3x3(x, w):
    # Mirrors the kernel's numerics: bf16 operands, f32 accumulation.
    B, L1, L2, _ = x.shape
    xp = jnp.pad(x.astype(jnp.bfloat16), ((0, 0), (1, 1), (1, 1), (0, 0)))
    wb = w.astype(jnp.bfloat16)
    out = jnp.zeros(x.shape[:3] + (w.shape[-1],), jnp.float32)
    for kh in range(3):
        for kw in range(3):
            out = out + jnp.einsum("bhwc,cd->bhwd",
                                   xp[:, kh:kh + L1, kw:kw + L2, :], wb[kh, kw],
                                   preferred_element_type=jnp.float32)
    return out


def _ref_ln(x, g, b):
    mu = jnp.mean(x, axis=-1, keepdims=True)
    var = jnp.mean(jnp.square(x - mu), axis=-1, keepdims=True)
    return ((x - mu) * jax.lax.rsqrt(var + EPS)
            * g.reshape(1, 1, 1, -1) + b.reshape(1, 1, 1, -1))


def resnet_reference(x, params):
    h = _ref_conv3x3(x, params["proj_w"])
    h = jnp.maximum(_ref_ln(h, params["proj_g"], params["proj_b"]), 0.0)
    for lp in params["layers"]:
        y = _ref_conv3x3(h, lp["c1"])
        y = jnp.maximum(_ref_ln(y, lp["g1"], lp["b1"]), 0.0)
        y = _ref_conv3x3(y, lp["c2"])
        y = _ref_ln(y, lp["g2"], lp["b2"])
        h = jnp.maximum(y + h, 0.0)
    # Final Linear in f32 (matches the kernel's num_labels==1 VPU path).
    return (jnp.einsum("bhwc,cd->bhwd", h, params["out_w"],
                       preferred_element_type=jnp.float32)
            + params["out_b"].reshape(1, 1, 1, -1))


# ------------------------------ parameter init ------------------------------
def init_params(key, hidden, C, num_layers, num_labels):
    ks = iter(jax.random.split(key, 5 + 6 * num_layers))

    def nrm(shape, scale):
        return scale * jax.random.normal(next(ks), shape, jnp.float32)

    params = {}
    params["proj_w"] = nrm((3, 3, hidden, C), 0.2)
    params["proj_g"] = 1.0 + nrm((C,), 0.1)
    params["proj_b"] = nrm((C,), 0.1)
    layers = []
    for _ in range(num_layers):
        # NOTE: the module's default zero_init_residual=True would zero g2; random
        # gammas are used so the full residual-block compute path is exercised.
        layers.append({
            "c1": nrm((3, 3, C, C), 0.3),
            "g1": 1.0 + nrm((C,), 0.1),
            "b1": nrm((C,), 0.1),
            "c2": nrm((3, 3, C, C), 0.3),
            "g2": 1.0 + nrm((C,), 0.1),
            "b2": nrm((C,), 0.1),
        })
    params["layers"] = layers
    params["out_w"] = nrm((C, num_labels), 0.3)
    params["out_b"] = nrm((num_labels,), 0.1)
    return params
    # TODO(synk): Bottleneck block path (num_layers >= 50) not implemented;
    # block='auto' with small num_layers selects BasicBlock, which is what we do.


if __name__ == "__main__":
    B, L1, L2 = 2, 8, 8
    hidden, num_layers, num_labels = 40, 2, 1
    C = hidden // 10  # num_channels = hidden_size // 10

    key = jax.random.PRNGKey(0)
    kx, kp = jax.random.split(key)
    x = jax.random.normal(kx, (B, L1, L2, hidden), jnp.float32)
    params = init_params(kp, hidden, C, num_layers, num_labels)

    out = resnet_pallas(x, params, num_layers, num_labels)
    out = jax.block_until_ready(out)

    ref = resnet_reference(x, params)
    assert out.shape == (B, L1, L2, num_labels), out.shape
    err = float(jnp.max(jnp.abs(out - ref)))
    # Tolerance covers bf16-operand / f32-accumulation ordering differences.
    assert err < 2e-3, f"max abs error {err}"
    print("KERNEL_OK")
</pallas_src>

<mosaic_0001>
module attributes {stable_mosaic.version = 11 : i64} {
  func.func @kernel(%arg0: i32, %arg1: memref<40x128xbf16, #tpu.memory_space<vmem>>, %arg2: memref<360x128xf32, #tpu.memory_space<vmem>>, %arg3: memref<36x128xf32, #tpu.memory_space<vmem>>, %arg4: memref<4x360xbf16, #tpu.memory_space<vmem>>, %arg5: memref<4x4x36xbf16, #tpu.memory_space<vmem>>, %arg6: memref<5x4x1xf32, #tpu.memory_space<vmem>>, %arg7: memref<5x4x1xf32, #tpu.memory_space<vmem>>, %arg8: memref<4x1xf32, #tpu.memory_space<vmem>>, %arg9: memref<1x1xf32, #tpu.memory_space<vmem>>, %arg10: memref<1x128xf32, #tpu.memory_space<vmem>>, %arg11: memref<360x128xf32, #tpu.memory_space<vmem>>, %arg12: memref<36x128xf32, #tpu.memory_space<vmem>>) attributes {dimension_semantics = [#tpu.dimension_semantics<parallel>], iteration_bounds = array<i64: 1>, scalar_prefetch = 0 : i64, scratch_operands = 2 : i64, tpu.core_type = #tpu.core_type<tc>, window_params = [{transform_indices = @transform_0, window_bounds = array<i64: 40, 128>}, {pipeline_mode = #tpu.pipeline_mode<synchronous>, transform_indices = @transform_1, window_bounds = array<i64: 360, 128>}, {pipeline_mode = #tpu.pipeline_mode<synchronous>, transform_indices = @transform_2, window_bounds = array<i64: 36, 128>}, {pipeline_mode = #tpu.pipeline_mode<synchronous>, transform_indices = @transform_3, window_bounds = array<i64: 4, 360>}, {pipeline_mode = #tpu.pipeline_mode<synchronous>, transform_indices = @transform_4, window_bounds = array<i64: 4, 4, 36>}, {pipeline_mode = #tpu.pipeline_mode<synchronous>, transform_indices = @transform_5, window_bounds = array<i64: 5, 4, 1>}, {pipeline_mode = #tpu.pipeline_mode<synchronous>, transform_indices = @transform_6, window_bounds = array<i64: 5, 4, 1>}, {pipeline_mode = #tpu.pipeline_mode<synchronous>, transform_indices = @transform_7, window_bounds = array<i64: 4, 1>}, {pipeline_mode = #tpu.pipeline_mode<synchronous>, transform_indices = @transform_8, window_bounds = array<i64: 1, 1>}, {transform_indices = @transform_9, window_bounds = array<i64: 1, 128>}]} {
    %c0 = arith.constant 0 : index
    %c0_0 = arith.constant 0 : index
    %0 = vector.load %arg1[%c0, %c0_0] : memref<40x128xbf16, #tpu.memory_space<vmem>>, vector<40x128xbf16>
    %1 = arith.extf %0 : vector<40x128xbf16> to vector<40x128xf32>
    %c0_1 = arith.constant 0 : index
    %c0_2 = arith.constant 0 : index
    %2 = vector.load %arg4[%c0_1, %c0_2] : memref<4x360xbf16, #tpu.memory_space<vmem>>, vector<4x360xbf16>
    %c9_i32 = arith.constant 9 : i32
    %3 = tpu.dynamic_rotate %1 by %c9_i32 dim 1 : vector<40x128xf32>, i32 -> vector<40x128xf32>
    %c0_3 = arith.constant 0 : index
    %c0_4 = arith.constant 0 : index
    %4 = vector.load %arg11[%c0_3, %c0_4] : memref<360x128xf32, #tpu.memory_space<vmem>>, vector<40x128xf32>
    tpu.vector_store %arg11[%c0_3, %c0_4], %3 {strides = array<i32>} : memref<360x128xf32, #tpu.memory_space<vmem>>, vector<40x128xf32>,
    %c8_i32 = arith.constant 8 : i32
    %5 = tpu.dynamic_rotate %1 by %c8_i32 dim 1 : vector<40x128xf32>, i32 -> vector<40x128xf32>
    %c40 = arith.constant 40 : index
    %c0_5 = arith.constant 0 : index
    %6 = vector.load %arg11[%c40, %c0_5] : memref<360x128xf32, #tpu.memory_space<vmem>>, vector<40x128xf32>
    tpu.vector_store %arg11[%c40, %c0_5], %5 {strides = array<i32>} : memref<360x128xf32, #tpu.memory_space<vmem>>, vector<40x128xf32>,
    %c7_i32 = arith.constant 7 : i32
    %7 = tpu.dynamic_rotate %1 by %c7_i32 dim 1 : vector<40x128xf32>, i32 -> vector<40x128xf32>
    %c80 = arith.constant 80 : index
    %c0_6 = arith.constant 0 : index
    %8 = vector.load %arg11[%c80, %c0_6] : memref<360x128xf32, #tpu.memory_space<vmem>>, vector<40x128xf32>
    tpu.vector_store %arg11[%c80, %c0_6], %7 {strides = array<i32>} : memref<360x128xf32, #tpu.memory_space<vmem>>, vector<40x128xf32>,
    %c1_i32 = arith.constant 1 : i32
    %9 = tpu.dynamic_rotate %1 by %c1_i32 dim 1 : vector<40x128xf32>, i32 -> vector<40x128xf32>
    %c120 = arith.constant 120 : index
    %c0_7 = arith.constant 0 : index
    %10 = vector.load %arg11[%c120, %c0_7] : memref<360x128xf32, #tpu.memory_space<vmem>>, vector<40x128xf32>
    tpu.vector_store %arg11[%c120, %c0_7], %9 {strides = array<i32>} : memref<360x128xf32, #tpu.memory_space<vmem>>, vector<40x128xf32>,
    %c160 = arith.constant 160 : index
    %c0_8 = arith.constant 0 : index
    %11 = vector.load %arg11[%c160, %c0_8] : memref<360x128xf32, #tpu.memory_space<vmem>>, vector<40x128xf32>
    tpu.vector_store %arg11[%c160, %c0_8], %1 {strides = array<i32>} : memref<360x128xf32, #tpu.memory_space<vmem>>, vector<40x128xf32>,
    %c127_i32 = arith.constant 127 : i32
    %12 = tpu.dynamic_rotate %1 by %c127_i32 dim 1 : vector<40x128xf32>, i32 -> vector<40x128xf32>
    %c200 = arith.constant 200 : index
    %c0_9 = arith.constant 0 : index
    %13 = vector.load %arg11[%c200, %c0_9] : memref<360x128xf32, #tpu.memory_space<vmem>>, vector<40x128xf32>
    tpu.vector_store %arg11[%c200, %c0_9], %12 {strides = array<i32>} : memref<360x128xf32, #tpu.memory_space<vmem>>, vector<40x128xf32>,
    %c121_i32 = arith.constant 121 : i32
    %14 = tpu.dynamic_rotate %1 by %c121_i32 dim 1 : vector<40x128xf32>, i32 -> vector<40x128xf32>
    %c240 = arith.constant 240 : index
    %c0_10 = arith.constant 0 : index
    %15 = vector.load %arg11[%c240, %c0_10] : memref<360x128xf32, #tpu.memory_space<vmem>>, vector<40x128xf32>
    tpu.vector_store %arg11[%c240, %c0_10], %14 {strides = array<i32>} : memref<360x128xf32, #tpu.memory_space<vmem>>, vector<40x128xf32>,
    %c120_i32 = arith.constant 120 : i32
    %16 = tpu.dynamic_rotate %1 by %c120_i32 dim 1 : vector<40x128xf32>, i32 -> vector<40x128xf32>
    %c280 = arith.constant 280 : index
    %c0_11 = arith.constant 0 : index
    %17 = vector.load %arg11[%c280, %c0_11] : memref<360x128xf32, #tpu.memory_space<vmem>>, vector<40x128xf32>
    tpu.vector_store %arg11[%c280, %c0_11], %16 {strides = array<i32>} : memref<360x128xf32, #tpu.memory_space<vmem>>, vector<40x128xf32>,
    %c119_i32 = arith.constant 119 : i32
    %18 = tpu.dynamic_rotate %1 by %c119_i32 dim 1 : vector<40x128xf32>, i32 -> vector<40x128xf32>
    %c320 = arith.constant 320 : index
    %c0_12 = arith.constant 0 : index
    %19 = vector.load %arg11[%c320, %c0_12] : memref<360x128xf32, #tpu.memory_space<vmem>>, vector<40x128xf32>
    tpu.vector_store %arg11[%c320, %c0_12], %18 {strides = array<i32>} : memref<360x128xf32, #tpu.memory_space<vmem>>, vector<40x128xf32>,
    %c0_13 = arith.constant 0 : index
    %c0_14 = arith.constant 0 : index
    %20 = vector.load %arg11[%c0_13, %c0_14] : memref<360x128xf32, #tpu.memory_space<vmem>>, vector<360x128xf32>
    %c0_15 = arith.constant 0 : index
    %c0_16 = arith.constant 0 : index
    %21 = vector.load %arg2[%c0_15, %c0_16] : memref<360x128xf32, #tpu.memory_space<vmem>>, vector<360x128xf32>
    %22 = arith.mulf %20, %21 : vector<360x128xf32>
    %23 = arith.truncf %22 : vector<360x128xf32> to vector<360x128xbf16>
    %cst = arith.constant dense<0.000000e+00> : vector<4x128xf32>
    %24 = tpu.matmul %2, %23, %cst {dimension_numbers = #tpu.dot_dimension_numbers<[1], [0], [0], [1], [0, 0, 1, 1], [], []>} : vector<4x360xbf16>, vector<360x128xbf16>, vector<4x128xf32> -> vector<4x128xf32>
    %c0_17 = arith.constant 0 : index
    %c0_18 = arith.constant 0 : index
    %c0_19 = arith.constant 0 : index
    %25 = vector.load %arg6[%c0_17, %c0_18, %c0_19] : memref<5x4x1xf32, #tpu.memory_space<vmem>>, vector<1x4x1xf32>
    %26 = vector.shape_cast %25 : vector<1x4x1xf32> to vector<4x1xf32>
    %c0_20 = arith.constant 0 : index
    %c0_21 = arith.constant 0 : index
    %c0_22 = arith.constant 0 : index
    %27 = vector.load %arg7[%c0_20, %c0_21, %c0_22] : memref<5x4x1xf32, #tpu.memory_space<vmem>>, vector<1x4x1xf32>
    %28 = vector.shape_cast %27 : vector<1x4x1xf32> to vector<4x1xf32>
    %cst_23 = arith.constant dense<0.000000e+00> : vector<128xf32>
    %29 = vector.multi_reduction <add>, %24, %cst_23 [0] : vector<4x128xf32> to vector<128xf32>
    %30 = vector.shape_cast %29 : vector<128xf32> to vector<1x128xf32>
    %cst_24 = arith.constant 4.000000e+00 : f32
    %31 = vector.broadcast %cst_24 : f32 to vector<1x128xf32>
    %32 = arith.divf %30, %31 : vector<1x128xf32>
    %33 = vector.broadcast %32 : vector<1x128xf32> to vector<4x128xf32>
    %34 = arith.subf %24, %33 : vector<4x128xf32>
    %35 = arith.mulf %34, %34 : vector<4x128xf32>
    %cst_25 = arith.constant dense<0.000000e+00> : vector<128xf32>
    %36 = vector.multi_reduction <add>, %35, %cst_25 [0] : vector<4x128xf32> to vector<128xf32>
    %37 = vector.shape_cast %36 : vector<128xf32> to vector<1x128xf32>
    %cst_26 = arith.constant 4.000000e+00 : f32
    %38 = vector.broadcast %cst_26 : f32 to vector<1x128xf32>
    %39 = arith.divf %37, %38 : vector<1x128xf32>
    %40 = vector.broadcast %32 : vector<1x128xf32> to vector<4x128xf32>
    %41 = arith.subf %24, %40 : vector<4x128xf32>
    %cst_27 = arith.constant 9.99999974E-6 : f32
    %42 = vector.broadcast %cst_27 : f32 to vector<1x128xf32>
    %43 = arith.addf %39, %42 : vector<1x128xf32>
    %44 = math.rsqrt %43 : vector<1x128xf32>
    %45 = vector.broadcast %44 : vector<1x128xf32> to vector<4x128xf32>
    %46 = arith.mulf %41, %45 : vector<4x128xf32>
    %47 = vector.broadcast %26 : vector<4x1xf32> to vector<4x128xf32>
    %48 = arith.mulf %46, %47 : vector<4x128xf32>
    %49 = vector.broadcast %28 : vector<4x1xf32> to vector<4x128xf32>
    %50 = arith.addf %48, %49 : vector<4x128xf32>
    %cst_28 = arith.constant 0.000000e+00 : f32
    %51 = vector.broadcast %cst_28 : f32 to vector<4x128xf32>
    %52 = arith.maximumf %50, %51 : vector<4x128xf32>
    %c0_29 = arith.constant 0 : index
    %c0_30 = arith.constant 0 : index
    %c0_31 = arith.constant 0 : index
    %53 = vector.load %arg5[%c0_29, %c0_30, %c0_31] : memref<4x4x36xbf16, #tpu.memory_space<vmem>>, vector<1x4x36xbf16>
    %54 = vector.shape_cast %53 : vector<1x4x36xbf16> to vector<4x36xbf16>
    %c9_i32_32 = arith.constant 9 : i32
    %55 = tpu.dynamic_rotate %52 by %c9_i32_32 dim 1 : vector<4x128xf32>, i32 -> vector<4x128xf32>
    %c0_33 = arith.constant 0 : index
    %c0_34 = arith.constant 0 : index
    %56 = vector.load %arg12[%c0_33, %c0_34] : memref<36x128xf32, #tpu.memory_space<vmem>>, vector<4x128xf32>
    tpu.vector_store %arg12[%c0_33, %c0_34], %55 {strides = array<i32>} : memref<36x128xf32, #tpu.memory_space<vmem>>, vector<4x128xf32>,
    %c8_i32_35 = arith.constant 8 : i32
    %57 = tpu.dynamic_rotate %52 by %c8_i32_35 dim 1 : vector<4x128xf32>, i32 -> vector<4x128xf32>
    %c4 = arith.constant 4 : index
    %c0_36 = arith.constant 0 : index
    %58 = vector.load %arg12[%c4, %c0_36] : memref<36x128xf32, #tpu.memory_space<vmem>>, vector<4x128xf32>
    tpu.vector_store %arg12[%c4, %c0_36], %57 {strides = array<i32>} : memref<36x128xf32, #tpu.memory_space<vmem>>, vector<4x128xf32>,
    %c7_i32_37 = arith.constant 7 : i32
    %59 = tpu.dynamic_rotate %52 by %c7_i32_37 dim 1 : vector<4x128xf32>, i32 -> vector<4x128xf32>
    %c8 = arith.constant 8 : index
    %c0_38 = arith.constant 0 : index
    %60 = vector.load %arg12[%c8, %c0_38] : memref<36x128xf32, #tpu.memory_space<vmem>>, vector<4x128xf32>
    tpu.vector_store %arg12[%c8, %c0_38], %59 {strides = array<i32>} : memref<36x128xf32, #tpu.memory_space<vmem>>, vector<4x128xf32>,
    %c1_i32_39 = arith.constant 1 : i32
    %61 = tpu.dynamic_rotate %52 by %c1_i32_39 dim 1 : vector<4x128xf32>, i32 -> vector<4x128xf32>
    %c12 = arith.constant 12 : index
    %c0_40 = arith.constant 0 : index
    %62 = vector.load %arg12[%c12, %c0_40] : memref<36x128xf32, #tpu.memory_space<vmem>>, vector<4x128xf32>
    tpu.vector_store %arg12[%c12, %c0_40], %61 {strides = array<i32>} : memref<36x128xf32, #tpu.memory_space<vmem>>, vector<4x128xf32>,
    %c16 = arith.constant 16 : index
    %c0_41 = arith.constant 0 : index
    %63 = vector.load %arg12[%c16, %c0_41] : memref<36x128xf32, #tpu.memory_space<vmem>>, vector<4x128xf32>
    tpu.vector_store %arg12[%c16, %c0_41], %52 {strides = array<i32>} : memref<36x128xf32, #tpu.memory_space<vmem>>, vector<4x128xf32>,
    %c127_i32_42 = arith.constant 127 : i32
    %64 = tpu.dynamic_rotate %52 by %c127_i32_42 dim 1 : vector<4x128xf32>, i32 -> vector<4x128xf32>
    %c20 = arith.constant 20 : index
    %c0_43 = arith.constant 0 : index
    %65 = vector.load %arg12[%c20, %c0_43] : memref<36x128xf32, #tpu.memory_space<vmem>>, vector<4x128xf32>
    tpu.vector_store %arg12[%c20, %c0_43], %64 {strides = array<i32>} : memref<36x128xf32, #tpu.memory_space<vmem>>, vector<4x128xf32>,
    %c121_i32_44 = arith.constant 121 : i32
    %66 = tpu.dynamic_rotate %52 by %c121_i32_44 dim 1 : vector<4x128xf32>, i32 -> vector<4x128xf32>
    %c24 = arith.constant 24 : index
    %c0_45 = arith.constant 0 : index
    %67 = vector.load %arg12[%c24, %c0_45] : memref<36x128xf32, #tpu.memory_space<vmem>>, vector<4x128xf32>
    tpu.vector_store %arg12[%c24, %c0_45], %66 {strides = array<i32>} : memref<36x128xf32, #tpu.memory_space<vmem>>, vector<4x128xf32>,
    %c120_i32_46 = arith.constant 120 : i32
    %68 = tpu.dynamic_rotate %52 by %c120_i32_46 dim 1 : vector<4x128xf32>, i32 -> vector<4x128xf32>
    %c28 = arith.constant 28 : index
    %c0_47 = arith.constant 0 : index
    %69 = vector.load %arg12[%c28, %c0_47] : memref<36x128xf32, #tpu.memory_space<vmem>>, vector<4x128xf32>
    tpu.vector_store %arg12[%c28, %c0_47], %68 {strides = array<i32>} : memref<36x128xf32, #tpu.memory_space<vmem>>, vector<4x128xf32>,
    %c119_i32_48 = arith.constant 119 : i32
    %70 = tpu.dynamic_rotate %52 by %c119_i32_48 dim 1 : vector<4x128xf32>, i32 -> vector<4x128xf32>
    %c32 = arith.constant 32 : index
    %c0_49 = arith.constant 0 : index
    %71 = vector.load %arg12[%c32, %c0_49] : memref<36x128xf32, #tpu.memory_space<vmem>>, vector<4x128xf32>
    tpu.vector_store %arg12[%c32, %c0_49], %70 {strides = array<i32>} : memref<36x128xf32, #tpu.memory_space<vmem>>, vector<4x128xf32>,
    %c0_50 = arith.constant 0 : index
    %c0_51 = arith.constant 0 : index
    %72 = vector.load %arg12[%c0_50, %c0_51] : memref<36x128xf32, #tpu.memory_space<vmem>>, vector<36x128xf32>
    %c0_52 = arith.constant 0 : index
    %c0_53 = arith.constant 0 : index
    %73 = vector.load %arg3[%c0_52, %c0_53] : memref<36x128xf32, #tpu.memory_space<vmem>>, vector<36x128xf32>
    %74 = arith.mulf %72, %73 : vector<36x128xf32>
    %75 = arith.truncf %74 : vector<36x128xf32> to vector<36x128xbf16>
    %cst_54 = arith.constant dense<0.000000e+00> : vector<4x128xf32>
    %76 = tpu.matmul %54, %75, %cst_54 {dimension_numbers = #tpu.dot_dimension_numbers<[1], [0], [0], [1], [0, 0, 1, 1], [], []>} : vector<4x36xbf16>, vector<36x128xbf16>, vector<4x128xf32> -> vector<4x128xf32>
    %c1 = arith.constant 1 : index
    %c0_55 = arith.constant 0 : index
    %c0_56 = arith.constant 0 : index
    %77 = vector.load %arg6[%c1, %c0_55, %c0_56] : memref<5x4x1xf32, #tpu.memory_space<vmem>>, vector<1x4x1xf32>
    %78 = vector.shape_cast %77 : vector<1x4x1xf32> to vector<4x1xf32>
    %c1_57 = arith.constant 1 : index
    %c0_58 = arith.constant 0 : index
    %c0_59 = arith.constant 0 : index
    %79 = vector.load %arg7[%c1_57, %c0_58, %c0_59] : memref<5x4x1xf32, #tpu.memory_space<vmem>>, vector<1x4x1xf32>
    %80 = vector.shape_cast %79 : vector<1x4x1xf32> to vector<4x1xf32>
    %cst_60 = arith.constant dense<0.000000e+00> : vector<128xf32>
    %81 = vector.multi_reduction <add>, %76, %cst_60 [0] : vector<4x128xf32> to vector<128xf32>
    %82 = vector.shape_cast %81 : vector<128xf32> to vector<1x128xf32>
    %cst_61 = arith.constant 4.000000e+00 : f32
    %83 = vector.broadcast %cst_61 : f32 to vector<1x128xf32>
    %84 = arith.divf %82, %83 : vector<1x128xf32>
    %85 = vector.broadcast %84 : vector<1x128xf32> to vector<4x128xf32>
    %86 = arith.subf %76, %85 : vector<4x128xf32>
    %87 = arith.mulf %86, %86 : vector<4x128xf32>
    %cst_62 = arith.constant dense<0.000000e+00> : vector<128xf32>
    %88 = vector.multi_reduction <add>, %87, %cst_62 [0] : vector<4x128xf32> to vector<128xf32>
    %89 = vector.shape_cast %88 : vector<128xf32> to vector<1x128xf32>
    %cst_63 = arith.constant 4.000000e+00 : f32
    %90 = vector.broadcast %cst_63 : f32 to vector<1x128xf32>
    %91 = arith.divf %89, %90 : vector<1x128xf32>
    %92 = vector.broadcast %84 : vector<1x128xf32> to vector<4x128xf32>
    %93 = arith.subf %76, %92 : vector<4x128xf32>
    %cst_64 = arith.constant 9.99999974E-6 : f32
    %94 = vector.broadcast %cst_64 : f32 to vector<1x128xf32>
    %95 = arith.addf %91, %94 : vector<1x128xf32>
    %96 = math.rsqrt %95 : vector<1x128xf32>
    %97 = vector.broadcast %96 : vector<1x128xf32> to vector<4x128xf32>
    %98 = arith.mulf %93, %97 : vector<4x128xf32>
    %99 = vector.broadcast %78 : vector<4x1xf32> to vector<4x128xf32>
    %100 = arith.mulf %98, %99 : vector<4x128xf32>
    %101 = vector.broadcast %80 : vector<4x1xf32> to vector<4x128xf32>
    %102 = arith.addf %100, %101 : vector<4x128xf32>
    %cst_65 = arith.constant 0.000000e+00 : f32
    %103 = vector.broadcast %cst_65 : f32 to vector<4x128xf32>
    %104 = arith.maximumf %102, %103 : vector<4x128xf32>
    %c1_66 = arith.constant 1 : index
    %c0_67 = arith.constant 0 : index
    %c0_68 = arith.constant 0 : index
    %105 = vector.load %arg5[%c1_66, %c0_67, %c0_68] : memref<4x4x36xbf16, #tpu.memory_space<vmem>>, vector<1x4x36xbf16>
    %106 = vector.shape_cast %105 : vector<1x4x36xbf16> to vector<4x36xbf16>
    %c9_i32_69 = arith.constant 9 : i32
    %107 = tpu.dynamic_rotate %104 by %c9_i32_69 dim 1 : vector<4x128xf32>, i32 -> vector<4x128xf32>
    %c0_70 = arith.constant 0 : index
    %c0_71 = arith.constant 0 : index
    %108 = vector.load %arg12[%c0_70, %c0_71] : memref<36x128xf32, #tpu.memory_space<vmem>>, vector<4x128xf32>
    tpu.vector_store %arg12[%c0_70, %c0_71], %107 {strides = array<i32>} : memref<36x128xf32, #tpu.memory_space<vmem>>, vector<4x128xf32>,
    %c8_i32_72 = arith.constant 8 : i32
    %109 = tpu.dynamic_rotate %104 by %c8_i32_72 dim 1 : vector<4x128xf32>, i32 -> vector<4x128xf32>
    %c4_73 = arith.constant 4 : index
    %c0_74 = arith.constant 0 : index
    %110 = vector.load %arg12[%c4_73, %c0_74] : memref<36x128xf32, #tpu.memory_space<vmem>>, vector<4x128xf32>
    tpu.vector_store %arg12[%c4_73, %c0_74], %109 {strides = array<i32>} : memref<36x128xf32, #tpu.memory_space<vmem>>, vector<4x128xf32>,
    %c7_i32_75 = arith.constant 7 : i32
    %111 = tpu.dynamic_rotate %104 by %c7_i32_75 dim 1 : vector<4x128xf32>, i32 -> vector<4x128xf32>
    %c8_76 = arith.constant 8 : index
    %c0_77 = arith.constant 0 : index
    %112 = vector.load %arg12[%c8_76, %c0_77] : memref<36x128xf32, #tpu.memory_space<vmem>>, vector<4x128xf32>
    tpu.vector_store %arg12[%c8_76, %c0_77], %111 {strides = array<i32>} : memref<36x128xf32, #tpu.memory_space<vmem>>, vector<4x128xf32>,
    %c1_i32_78 = arith.constant 1 : i32
    %113 = tpu.dynamic_rotate %104 by %c1_i32_78 dim 1 : vector<4x128xf32>, i32 -> vector<4x128xf32>
    %c12_79 = arith.constant 12 : index
    %c0_80 = arith.constant 0 : index
    %114 = vector.load %arg12[%c12_79, %c0_80] : memref<36x128xf32, #tpu.memory_space<vmem>>, vector<4x128xf32>
    tpu.vector_store %arg12[%c12_79, %c0_80], %113 {strides = array<i32>} : memref<36x128xf32, #tpu.memory_space<vmem>>, vector<4x128xf32>,
    %c16_81 = arith.constant 16 : index
    %c0_82 = arith.constant 0 : index
    %115 = vector.load %arg12[%c16_81, %c0_82] : memref<36x128xf32, #tpu.memory_space<vmem>>, vector<4x128xf32>
    tpu.vector_store %arg12[%c16_81, %c0_82], %104 {strides = array<i32>} : memref<36x128xf32, #tpu.memory_space<vmem>>, vector<4x128xf32>,
    %c127_i32_83 = arith.constant 127 : i32
    %116 = tpu.dynamic_rotate %104 by %c127_i32_83 dim 1 : vector<4x128xf32>, i32 -> vector<4x128xf32>
    %c20_84 = arith.constant 20 : index
    %c0_85 = arith.constant 0 : index
    %117 = vector.load %arg12[%c20_84, %c0_85] : memref<36x128xf32, #tpu.memory_space<vmem>>, vector<4x128xf32>
    tpu.vector_store %arg12[%c20_84, %c0_85], %116 {strides = array<i32>} : memref<36x128xf32, #tpu.memory_space<vmem>>, vector<4x128xf32>,
    %c121_i32_86 = arith.constant 121 : i32
    %118 = tpu.dynamic_rotate %104 by %c121_i32_86 dim 1 : vector<4x128xf32>, i32 -> vector<4x128xf32>
    %c24_87 = arith.constant 24 : index
    %c0_88 = arith.constant 0 : index
    %119 = vector.load %arg12[%c24_87, %c0_88] : memref<36x128xf32, #tpu.memory_space<vmem>>, vector<4x128xf32>
    tpu.vector_store %arg12[%c24_87, %c0_88], %118 {strides = array<i32>} : memref<36x128xf32, #tpu.memory_space<vmem>>, vector<4x128xf32>,
    %c120_i32_89 = arith.constant 120 : i32
    %120 = tpu.dynamic_rotate %104 by %c120_i32_89 dim 1 : vector<4x128xf32>, i32 -> vector<4x128xf32>
    %c28_90 = arith.constant 28 : index
    %c0_91 = arith.constant 0 : index
    %121 = vector.load %arg12[%c28_90, %c0_91] : memref<36x128xf32, #tpu.memory_space<vmem>>, vector<4x128xf32>
    tpu.vector_store %arg12[%c28_90, %c0_91], %120 {strides = array<i32>} : memref<36x128xf32, #tpu.memory_space<vmem>>, vector<4x128xf32>,
    %c119_i32_92 = arith.constant 119 : i32
    %122 = tpu.dynamic_rotate %104 by %c119_i32_92 dim 1 : vector<4x128xf32>, i32 -> vector<4x128xf32>
    %c32_93 = arith.constant 32 : index
    %c0_94 = arith.constant 0 : index
    %123 = vector.load %arg12[%c32_93, %c0_94] : memref<36x128xf32, #tpu.memory_space<vmem>>, vector<4x128xf32>
    tpu.vector_store %arg12[%c32_93, %c0_94], %122 {strides = array<i32>} : memref<36x128xf32, #tpu.memory_space<vmem>>, vector<4x128xf32>,
    %c0_95 = arith.constant 0 : index
    %c0_96 = arith.constant 0 : index
    %124 = vector.load %arg12[%c0_95, %c0_96] : memref<36x128xf32, #tpu.memory_space<vmem>>, vector<36x128xf32>
    %c0_97 = arith.constant 0 : index
    %c0_98 = arith.constant 0 : index
    %125 = vector.load %arg3[%c0_97, %c0_98] : memref<36x128xf32, #tpu.memory_space<vmem>>, vector<36x128xf32>
    %126 = arith.mulf %124, %125 : vector<36x128xf32>
    %127 = arith.truncf %126 : vector<36x128xf32> to vector<36x128xbf16>
    %cst_99 = arith.constant dense<0.000000e+00> : vector<4x128xf32>
    %128 = tpu.matmul %106, %127, %cst_99 {dimension_numbers = #tpu.dot_dimension_numbers<[1], [0], [0], [1], [0, 0, 1, 1], [], []>} : vector<4x36xbf16>, vector<36x128xbf16>, vector<4x128xf32> -> vector<4x128xf32>
    %c2 = arith.constant 2 : index
    %c0_100 = arith.constant 0 : index
    %c0_101 = arith.constant 0 : index
    %129 = vector.load %arg6[%c2, %c0_100, %c0_101] : memref<5x4x1xf32, #tpu.memory_space<vmem>>, vector<1x4x1xf32>
    %130 = vector.shape_cast %129 : vector<1x4x1xf32> to vector<4x1xf32>
    %c2_102 = arith.constant 2 : index
    %c0_103 = arith.constant 0 : index
    %c0_104 = arith.constant 0 : index
    %131 = vector.load %arg7[%c2_102, %c0_103, %c0_104] : memref<5x4x1xf32, #tpu.memory_space<vmem>>, vector<1x4x1xf32>
    %132 = vector.shape_cast %131 : vector<1x4x1xf32> to vector<4x1xf32>
    %cst_105 = arith.constant dense<0.000000e+00> : vector<128xf32>
    %133 = vector.multi_reduction <add>, %128, %cst_105 [0] : vector<4x128xf32> to vector<128xf32>
    %134 = vector.shape_cast %133 : vector<128xf32> to vector<1x128xf32>
    %cst_106 = arith.constant 4.000000e+00 : f32
    %135 = vector.broadcast %cst_106 : f32 to vector<1x128xf32>
    %136 = arith.divf %134, %135 : vector<1x128xf32>
    %137 = vector.broadcast %136 : vector<1x128xf32> to vector<4x128xf32>
    %138 = arith.subf %128, %137 : vector<4x128xf32>
    %139 = arith.mulf %138, %138 : vector<4x128xf32>
    %cst_107 = arith.constant dense<0.000000e+00> : vector<128xf32>
    %140 = vector.multi_reduction <add>, %139, %cst_107 [0] : vector<4x128xf32> to vector<128xf32>
    %141 = vector.shape_cast %140 : vector<128xf32> to vector<1x128xf32>
    %cst_108 = arith.constant 4.000000e+00 : f32
    %142 = vector.broadcast %cst_108 : f32 to vector<1x128xf32>
    %143 = arith.divf %141, %142 : vector<1x128xf32>
    %144 = vector.broadcast %136 : vector<1x128xf32> to vector<4x128xf32>
    %145 = arith.subf %128, %144 : vector<4x128xf32>
    %cst_109 = arith.constant 9.99999974E-6 : f32
    %146 = vector.broadcast %cst_109 : f32 to vector<1x128xf32>
    %147 = arith.addf %143, %146 : vector<1x128xf32>
    %148 = math.rsqrt %147 : vector<1x128xf32>
    %149 = vector.broadcast %148 : vector<1x128xf32> to vector<4x128xf32>
    %150 = arith.mulf %145, %149 : vector<4x128xf32>
    %151 = vector.broadcast %130 : vector<4x1xf32> to vector<4x128xf32>
    %152 = arith.mulf %150, %151 : vector<4x128xf32>
    %153 = vector.broadcast %132 : vector<4x1xf32> to vector<4x128xf32>
    %154 = arith.addf %152, %153 : vector<4x128xf32>
    %155 = arith.addf %154, %52 : vector<4x128xf32>
    %cst_110 = arith.constant 0.000000e+00 : f32
    %156 = vector.broadcast %cst_110 : f32 to vector<4x128xf32>
    %157 = arith.maximumf %155, %156 : vector<4x128xf32>
    %c2_111 = arith.constant 2 : index
    %c0_112 = arith.constant 0 : index
    %c0_113 = arith.constant 0 : index
    %158 = vector.load %arg5[%c2_111, %c0_112, %c0_113] : memref<4x4x36xbf16, #tpu.memory_space<vmem>>, vector<1x4x36xbf16>
    %159 = vector.shape_cast %158 : vector<1x4x36xbf16> to vector<4x36xbf16>
    %c9_i32_114 = arith.constant 9 : i32
    %160 = tpu.dynamic_rotate %157 by %c9_i32_114 dim 1 : vector<4x128xf32>, i32 -> vector<4x128xf32>
    %c0_115 = arith.constant 0 : index
    %c0_116 = arith.constant 0 : index
    %161 = vector.load %arg12[%c0_115, %c0_116] : memref<36x128xf32, #tpu.memory_space<vmem>>, vector<4x128xf32>
    tpu.vector_store %arg12[%c0_115, %c0_116], %160 {strides = array<i32>} : memref<36x128xf32, #tpu.memory_space<vmem>>, vector<4x128xf32>,
    %c8_i32_117 = arith.constant 8 : i32
    %162 = tpu.dynamic_rotate %157 by %c8_i32_117 dim 1 : vector<4x128xf32>, i32 -> vector<4x128xf32>
    %c4_118 = arith.constant 4 : index
    %c0_119 = arith.constant 0 : index
    %163 = vector.load %arg12[%c4_118, %c0_119] : memref<36x128xf32, #tpu.memory_space<vmem>>, vector<4x128xf32>
    tpu.vector_store %arg12[%c4_118, %c0_119], %162 {strides = array<i32>} : memref<36x128xf32, #tpu.memory_space<vmem>>, vector<4x128xf32>,
    %c7_i32_120 = arith.constant 7 : i32
    %164 = tpu.dynamic_rotate %157 by %c7_i32_120 dim 1 : vector<4x128xf32>, i32 -> vector<4x128xf32>
    %c8_121 = arith.constant 8 : index
    %c0_122 = arith.constant 0 : index
    %165 = vector.load %arg12[%c8_121, %c0_122] : memref<36x128xf32, #tpu.memory_space<vmem>>, vector<4x128xf32>
    tpu.vector_store %arg12[%c8_121, %c0_122], %164 {strides = array<i32>} : memref<36x128xf32, #tpu.memory_space<vmem>>, vector<4x128xf32>,
    %c1_i32_123 = arith.constant 1 : i32
    %166 = tpu.dynamic_rotate %157 by %c1_i32_123 dim 1 : vector<4x128xf32>, i32 -> vector<4x128xf32>
    %c12_124 = arith.constant 12 : index
    %c0_125 = arith.constant 0 : index
    %167 = vector.load %arg12[%c12_124, %c0_125] : memref<36x128xf32, #tpu.memory_space<vmem>>, vector<4x128xf32>
    tpu.vector_store %arg12[%c12_124, %c0_125], %166 {strides = array<i32>} : memref<36x128xf32, #tpu.memory_space<vmem>>, vector<4x128xf32>,
    %c16_126 = arith.constant 16 : index
    %c0_127 = arith.constant 0 : index
    %168 = vector.load %arg12[%c16_126, %c0_127] : memref<36x128xf32, #tpu.memory_space<vmem>>, vector<4x128xf32>
    tpu.vector_store %arg12[%c16_126, %c0_127], %157 {strides = array<i32>} : memref<36x128xf32, #tpu.memory_space<vmem>>, vector<4x128xf32>,
    %c127_i32_128 = arith.constant 127 : i32
    %169 = tpu.dynamic_rotate %157 by %c127_i32_128 dim 1 : vector<4x128xf32>, i32 -> vector<4x128xf32>
    %c20_129 = arith.constant 20 : index
    %c0_130 = arith.constant 0 : index
    %170 = vector.load %arg12[%c20_129, %c0_130] : memref<36x128xf32, #tpu.memory_space<vmem>>, vector<4x128xf32>
    tpu.vector_store %arg12[%c20_129, %c0_130], %169 {strides = array<i32>} : memref<36x128xf32, #tpu.memory_space<vmem>>, vector<4x128xf32>,
    %c121_i32_131 = arith.constant 121 : i32
    %171 = tpu.dynamic_rotate %157 by %c121_i32_131 dim 1 : vector<4x128xf32>, i32 -> vector<4x128xf32>
    %c24_132 = arith.constant 24 : index
    %c0_133 = arith.constant 0 : index
    %172 = vector.load %arg12[%c24_132, %c0_133] : memref<36x128xf32, #tpu.memory_space<vmem>>, vector<4x128xf32>
    tpu.vector_store %arg12[%c24_132, %c0_133], %171 {strides = array<i32>} : memref<36x128xf32, #tpu.memory_space<vmem>>, vector<4x128xf32>,
    %c120_i32_134 = arith.constant 120 : i32
    %173 = tpu.dynamic_rotate %157 by %c120_i32_134 dim 1 : vector<4x128xf32>, i32 -> vector<4x128xf32>
    %c28_135 = arith.constant 28 : index
    %c0_136 = arith.constant 0 : index
    %174 = vector.load %arg12[%c28_135, %c0_136] : memref<36x128xf32, #tpu.memory_space<vmem>>, vector<4x128xf32>
    tpu.vector_store %arg12[%c28_135, %c0_136], %173 {strides = array<i32>} : memref<36x128xf32, #tpu.memory_space<vmem>>, vector<4x128xf32>,
    %c119_i32_137 = arith.constant 119 : i32
    %175 = tpu.dynamic_rotate %157 by %c119_i32_137 dim 1 : vector<4x128xf32>, i32 -> vector<4x128xf32>
    %c32_138 = arith.constant 32 : index
    %c0_139 = arith.constant 0 : index
    %176 = vector.load %arg12[%c32_138, %c0_139] : memref<36x128xf32, #tpu.memory_space<vmem>>, vector<4x128xf32>
    tpu.vector_store %arg12[%c32_138, %c0_139], %175 {strides = array<i32>} : memref<36x128xf32, #tpu.memory_space<vmem>>, vector<4x128xf32>,
    %c0_140 = arith.constant 0 : index
    %c0_141 = arith.constant 0 : index
    %177 = vector.load %arg12[%c0_140, %c0_141] : memref<36x128xf32, #tpu.memory_space<vmem>>, vector<36x128xf32>
    %c0_142 = arith.constant 0 : index
    %c0_143 = arith.constant 0 : index
    %178 = vector.load %arg3[%c0_142, %c0_143] : memref<36x128xf32, #tpu.memory_space<vmem>>, vector<36x128xf32>
    %179 = arith.mulf %177, %178 : vector<36x128xf32>
    %180 = arith.truncf %179 : vector<36x128xf32> to vector<36x128xbf16>
    %cst_144 = arith.constant dense<0.000000e+00> : vector<4x128xf32>
    %181 = tpu.matmul %159, %180, %cst_144 {dimension_numbers = #tpu.dot_dimension_numbers<[1], [0], [0], [1], [0, 0, 1, 1], [], []>} : vector<4x36xbf16>, vector<36x128xbf16>, vector<4x128xf32> -> vector<4x128xf32>
    %c3 = arith.constant 3 : index
    %c0_145 = arith.constant 0 : index
    %c0_146 = arith.constant 0 : index
    %182 = vector.load %arg6[%c3, %c0_145, %c0_146] : memref<5x4x1xf32, #tpu.memory_space<vmem>>, vector<1x4x1xf32>
    %183 = vector.shape_cast %182 : vector<1x4x1xf32> to vector<4x1xf32>
    %c3_147 = arith.constant 3 : index
    %c0_148 = arith.constant 0 : index
    %c0_149 = arith.constant 0 : index
    %184 = vector.load %arg7[%c3_147, %c0_148, %c0_149] : memref<5x4x1xf32, #tpu.memory_space<vmem>>, vector<1x4x1xf32>
    %185 = vector.shape_cast %184 : vector<1x4x1xf32> to vector<4x1xf32>
    %cst_150 = arith.constant dense<0.000000e+00> : vector<128xf32>
    %186 = vector.multi_reduction <add>, %181, %cst_150 [0] : vector<4x128xf32> to vector<128xf32>
    %187 = vector.shape_cast %186 : vector<128xf32> to vector<1x128xf32>
    %cst_151 = arith.constant 4.000000e+00 : f32
    %188 = vector.broadcast %cst_151 : f32 to vector<1x128xf32>
    %189 = arith.divf %187, %188 : vector<1x128xf32>
    %190 = vector.broadcast %189 : vector<1x128xf32> to vector<4x128xf32>
    %191 = arith.subf %181, %190 : vector<4x128xf32>
    %192 = arith.mulf %191, %191 : vector<4x128xf32>
    %cst_152 = arith.constant dense<0.000000e+00> : vector<128xf32>
    %193 = vector.multi_reduction <add>, %192, %cst_152 [0] : vector<4x128xf32> to vector<128xf32>
    %194 = vector.shape_cast %193 : vector<128xf32> to vector<1x128xf32>
    %cst_153 = arith.constant 4.000000e+00 : f32
    %195 = vector.broadcast %cst_153 : f32 to vector<1x128xf32>
    %196 = arith.divf %194, %195 : vector<1x128xf32>
    %197 = vector.broadcast %189 : vector<1x128xf32> to vector<4x128xf32>
    %198 = arith.subf %181, %197 : vector<4x128xf32>
    %cst_154 = arith.constant 9.99999974E-6 : f32
    %199 = vector.broadcast %cst_154 : f32 to vector<1x128xf32>
    %200 = arith.addf %196, %199 : vector<1x128xf32>
    %201 = math.rsqrt %200 : vector<1x128xf32>
    %202 = vector.broadcast %201 : vector<1x128xf32> to vector<4x128xf32>
    %203 = arith.mulf %198, %202 : vector<4x128xf32>
    %204 = vector.broadcast %183 : vector<4x1xf32> to vector<4x128xf32>
    %205 = arith.mulf %203, %204 : vector<4x128xf32>
    %206 = vector.broadcast %185 : vector<4x1xf32> to vector<4x128xf32>
    %207 = arith.addf %205, %206 : vector<4x128xf32>
    %cst_155 = arith.constant 0.000000e+00 : f32
    %208 = vector.broadcast %cst_155 : f32 to vector<4x128xf32>
    %209 = arith.maximumf %207, %208 : vector<4x128xf32>
    %c3_156 = arith.constant 3 : index
    %c0_157 = arith.constant 0 : index
    %c0_158 = arith.constant 0 : index
    %210 = vector.load %arg5[%c3_156, %c0_157, %c0_158] : memref<4x4x36xbf16, #tpu.memory_space<vmem>>, vector<1x4x36xbf16>
    %211 = vector.shape_cast %210 : vector<1x4x36xbf16> to vector<4x36xbf16>
    %c9_i32_159 = arith.constant 9 : i32
    %212 = tpu.dynamic_rotate %209 by %c9_i32_159 dim 1 : vector<4x128xf32>, i32 -> vector<4x128xf32>
    %c0_160 = arith.constant 0 : index
    %c0_161 = arith.constant 0 : index
    %213 = vector.load %arg12[%c0_160, %c0_161] : memref<36x128xf32, #tpu.memory_space<vmem>>, vector<4x128xf32>
    tpu.vector_store %arg12[%c0_160, %c0_161], %212 {strides = array<i32>} : memref<36x128xf32, #tpu.memory_space<vmem>>, vector<4x128xf32>,
    %c8_i32_162 = arith.constant 8 : i32
    %214 = tpu.dynamic_rotate %209 by %c8_i32_162 dim 1 : vector<4x128xf32>, i32 -> vector<4x128xf32>
    %c4_163 = arith.constant 4 : index
    %c0_164 = arith.constant 0 : index
    %215 = vector.load %arg12[%c4_163, %c0_164] : memref<36x128xf32, #tpu.memory_space<vmem>>, vector<4x128xf32>
    tpu.vector_store %arg12[%c4_163, %c0_164], %214 {strides = array<i32>} : memref<36x128xf32, #tpu.memory_space<vmem>>, vector<4x128xf32>,
    %c7_i32_165 = arith.constant 7 : i32
    %216 = tpu.dynamic_rotate %209 by %c7_i32_165 dim 1 : vector<4x128xf32>, i32 -> vector<4x128xf32>
    %c8_166 = arith.constant 8 : index
    %c0_167 = arith.constant 0 : index
    %217 = vector.load %arg12[%c8_166, %c0_167] : memref<36x128xf32, #tpu.memory_space<vmem>>, vector<4x128xf32>
    tpu.vector_store %arg12[%c8_166, %c0_167], %216 {strides = array<i32>} : memref<36x128xf32, #tpu.memory_space<vmem>>, vector<4x128xf32>,
    %c1_i32_168 = arith.constant 1 : i32
    %218 = tpu.dynamic_rotate %209 by %c1_i32_168 dim 1 : vector<4x128xf32>, i32 -> vector<4x128xf32>
    %c12_169 = arith.constant 12 : index
    %c0_170 = arith.constant 0 : index
    %219 = vector.load %arg12[%c12_169, %c0_170] : memref<36x128xf32, #tpu.memory_space<vmem>>, vector<4x128xf32>
    tpu.vector_store %arg12[%c12_169, %c0_170], %218 {strides = array<i32>} : memref<36x128xf32, #tpu.memory_space<vmem>>, vector<4x128xf32>,
    %c16_171 = arith.constant 16 : index
    %c0_172 = arith.constant 0 : index
    %220 = vector.load %arg12[%c16_171, %c0_172] : memref<36x128xf32, #tpu.memory_space<vmem>>, vector<4x128xf32>
    tpu.vector_store %arg12[%c16_171, %c0_172], %209 {strides = array<i32>} : memref<36x128xf32, #tpu.memory_space<vmem>>, vector<4x128xf32>,
    %c127_i32_173 = arith.constant 127 : i32
    %221 = tpu.dynamic_rotate %209 by %c127_i32_173 dim 1 : vector<4x128xf32>, i32 -> vector<4x128xf32>
    %c20_174 = arith.constant 20 : index
    %c0_175 = arith.constant 0 : index
    %222 = vector.load %arg12[%c20_174, %c0_175] : memref<36x128xf32, #tpu.memory_space<vmem>>, vector<4x128xf32>
    tpu.vector_store %arg12[%c20_174, %c0_175], %221 {strides = array<i32>} : memref<36x128xf32, #tpu.memory_space<vmem>>, vector<4x128xf32>,
    %c121_i32_176 = arith.constant 121 : i32
    %223 = tpu.dynamic_rotate %209 by %c121_i32_176 dim 1 : vector<4x128xf32>, i32 -> vector<4x128xf32>
    %c24_177 = arith.constant 24 : index
    %c0_178 = arith.constant 0 : index
    %224 = vector.load %arg12[%c24_177, %c0_178] : memref<36x128xf32, #tpu.memory_space<vmem>>, vector<4x128xf32>
    tpu.vector_store %arg12[%c24_177, %c0_178], %223 {strides = array<i32>} : memref<36x128xf32, #tpu.memory_space<vmem>>, vector<4x128xf32>,
    %c120_i32_179 = arith.constant 120 : i32
    %225 = tpu.dynamic_rotate %209 by %c120_i32_179 dim 1 : vector<4x128xf32>, i32 -> vector<4x128xf32>
    %c28_180 = arith.constant 28 : index
    %c0_181 = arith.constant 0 : index
    %226 = vector.load %arg12[%c28_180, %c0_181] : memref<36x128xf32, #tpu.memory_space<vmem>>, vector<4x128xf32>
    tpu.vector_store %arg12[%c28_180, %c0_181], %225 {strides = array<i32>} : memref<36x128xf32, #tpu.memory_space<vmem>>, vector<4x128xf32>,
    %c119_i32_182 = arith.constant 119 : i32
    %227 = tpu.dynamic_rotate %209 by %c119_i32_182 dim 1 : vector<4x128xf32>, i32 -> vector<4x128xf32>
    %c32_183 = arith.constant 32 : index
    %c0_184 = arith.constant 0 : index
    %228 = vector.load %arg12[%c32_183, %c0_184] : memref<36x128xf32, #tpu.memory_space<vmem>>, vector<4x128xf32>
    tpu.vector_store %arg12[%c32_183, %c0_184], %227 {strides = array<i32>} : memref<36x128xf32, #tpu.memory_space<vmem>>, vector<4x128xf32>,
    %c0_185 = arith.constant 0 : index
    %c0_186 = arith.constant 0 : index
    %229 = vector.load %arg12[%c0_185, %c0_186] : memref<36x128xf32, #tpu.memory_space<vmem>>, vector<36x128xf32>
    %c0_187 = arith.constant 0 : index
    %c0_188 = arith.constant 0 : index
    %230 = vector.load %arg3[%c0_187, %c0_188] : memref<36x128xf32, #tpu.memory_space<vmem>>, vector<36x128xf32>
    %231 = arith.mulf %229, %230 : vector<36x128xf32>
    %232 = arith.truncf %231 : vector<36x128xf32> to vector<36x128xbf16>
    %cst_189 = arith.constant dense<0.000000e+00> : vector<4x128xf32>
    %233 = tpu.matmul %211, %232, %cst_189 {dimension_numbers = #tpu.dot_dimension_numbers<[1], [0], [0], [1], [0, 0, 1, 1], [], []>} : vector<4x36xbf16>, vector<36x128xbf16>, vector<4x128xf32> -> vector<4x128xf32>
    %c4_190 = arith.constant 4 : index
    %c0_191 = arith.constant 0 : index
    %c0_192 = arith.constant 0 : index
    %234 = vector.load %arg6[%c4_190, %c0_191, %c0_192] : memref<5x4x1xf32, #tpu.memory_space<vmem>>, vector<1x4x1xf32>
    %235 = vector.shape_cast %234 : vector<1x4x1xf32> to vector<4x1xf32>
    %c4_193 = arith.constant 4 : index
    %c0_194 = arith.constant 0 : index
    %c0_195 = arith.constant 0 : index
    %236 = vector.load %arg7[%c4_193, %c0_194, %c0_195] : memref<5x4x1xf32, #tpu.memory_space<vmem>>, vector<1x4x1xf32>
    %237 = vector.shape_cast %236 : vector<1x4x1xf32> to vector<4x1xf32>
    %cst_196 = arith.constant dense<0.000000e+00> : vector<128xf32>
    %238 = vector.multi_reduction <add>, %233, %cst_196 [0] : vector<4x128xf32> to vector<128xf32>
    %239 = vector.shape_cast %238 : vector<128xf32> to vector<1x128xf32>
    %cst_197 = arith.constant 4.000000e+00 : f32
    %240 = vector.broadcast %cst_197 : f32 to vector<1x128xf32>
    %241 = arith.divf %239, %240 : vector<1x128xf32>
    %242 = vector.broadcast %241 : vector<1x128xf32> to vector<4x128xf32>
    %243 = arith.subf %233, %242 : vector<4x128xf32>
    %244 = arith.mulf %243, %243 : vector<4x128xf32>
    %cst_198 = arith.constant dense<0.000000e+00> : vector<128xf32>
    %245 = vector.multi_reduction <add>, %244, %cst_198 [0] : vector<4x128xf32> to vector<128xf32>
    %246 = vector.shape_cast %245 : vector<128xf32> to vector<1x128xf32>
    %cst_199 = arith.constant 4.000000e+00 : f32
    %247 = vector.broadcast %cst_199 : f32 to vector<1x128xf32>
    %248 = arith.divf %246, %247 : vector<1x128xf32>
    %249 = vector.broadcast %241 : vector<1x128xf32> to vector<4x128xf32>
    %250 = arith.subf %233, %249 : vector<4x128xf32>
    %cst_200 = arith.constant 9.99999974E-6 : f32
    %251 = vector.broadcast %cst_200 : f32 to vector<1x128xf32>
    %252 = arith.addf %248, %251 : vector<1x128xf32>
    %253 = math.rsqrt %252 : vector<1x128xf32>
    %254 = vector.broadcast %253 : vector<1x128xf32> to vector<4x128xf32>
    %255 = arith.mulf %250, %254 : vector<4x128xf32>
    %256 = vector.broadcast %235 : vector<4x1xf32> to vector<4x128xf32>
    %257 = arith.mulf %255, %256 : vector<4x128xf32>
    %258 = vector.broadcast %237 : vector<4x1xf32> to vector<4x128xf32>
    %259 = arith.addf %257, %258 : vector<4x128xf32>
    %260 = arith.addf %259, %157 : vector<4x128xf32>
    %cst_201 = arith.constant 0.000000e+00 : f32
    %261 = vector.broadcast %cst_201 : f32 to vector<4x128xf32>
    %262 = arith.maximumf %260, %261 : vector<4x128xf32>
    %c0_202 = arith.constant 0 : index
    %c0_203 = arith.constant 0 : index
    %263 = vector.load %arg8[%c0_202, %c0_203] : memref<4x1xf32, #tpu.memory_space<vmem>>, vector<4x1xf32>
    %264 = vector.broadcast %263 : vector<4x1xf32> to vector<4x128xf32>
    %265 = arith.mulf %262, %264 : vector<4x128xf32>
    %cst_204 = arith.constant dense<0.000000e+00> : vector<128xf32>
    %266 = vector.multi_reduction <add>, %265, %cst_204 [0] : vector<4x128xf32> to vector<128xf32>
    %267 = vector.shape_cast %266 : vector<128xf32> to vector<1x128xf32>
    %c0_205 = arith.constant 0 : index
    %c0_206 = arith.constant 0 : index
    %268 = vector.load %arg9[%c0_205, %c0_206] : memref<1x1xf32, #tpu.memory_space<vmem>>, vector<1x1xf32>
    %269 = vector.broadcast %268 : vector<1x1xf32> to vector<1x128xf32>
    %270 = arith.addf %267, %269 : vector<1x128xf32>
    %c0_207 = arith.constant 0 : index
    %c0_208 = arith.constant 0 : index
    %271 = vector.load %arg10[%c0_207, %c0_208] : memref<1x128xf32, #tpu.memory_space<vmem>>, vector<1x128xf32>
    tpu.vector_store %arg10[%c0_207, %c0_208], %270 {strides = array<i32>} : memref<1x128xf32, #tpu.memory_space<vmem>>, vector<1x128xf32>,
    return
  }
  func.func @transform_0(%arg0: i32) -> (i32, i32) {
    %c0_i32 = arith.constant 0 : i32
    %c0_i32_0 = arith.constant 0 : i32
    return %c0_i32, %arg0 : i32, i32
  }
  func.func @transform_1(%arg0: i32) -> (i32, i32) {
    %c0_i32 = arith.constant 0 : i32
    %c0_i32_0 = arith.constant 0 : i32
    %c0_i32_1 = arith.constant 0 : i32
    return %c0_i32, %c0_i32_0 : i32, i32
  }
  func.func @transform_2(%arg0: i32) -> (i32, i32) {
    %c0_i32 = arith.constant 0 : i32
    %c0_i32_0 = arith.constant 0 : i32
    %c0_i32_1 = arith.constant 0 : i32
    return %c0_i32, %c0_i32_0 : i32, i32
  }
  func.func @transform_3(%arg0: i32) -> (i32, i32) {
    %c0_i32 = arith.constant 0 : i32
    %c0_i32_0 = arith.constant 0 : i32
    %c0_i32_1 = arith.constant 0 : i32
    return %c0_i32, %c0_i32_0 : i32, i32
  }
  func.func @transform_4(%arg0: i32) -> (i32, i32, i32) {
    %c0_i32 = arith.constant 0 : i32
    %c0_i32_0 = arith.constant 0 : i32
    %c0_i32_1 = arith.constant 0 : i32
    %c0_i32_2 = arith.constant 0 : i32
    return %c0_i32, %c0_i32_0, %c0_i32_1 : i32, i32, i32
  }
  func.func @transform_5(%arg0: i32) -> (i32, i32, i32) {
    %c0_i32 = arith.constant 0 : i32
    %c0_i32_0 = arith.constant 0 : i32
    %c0_i32_1 = arith.constant 0 : i32
    %c0_i32_2 = arith.constant 0 : i32
    return %c0_i32, %c0_i32_0, %c0_i32_1 : i32, i32, i32
  }
  func.func @transform_6(%arg0: i32) -> (i32, i32, i32) {
    %c0_i32 = arith.constant 0 : i32
    %c0_i32_0 = arith.constant 0 : i32
    %c0_i32_1 = arith.constant 0 : i32
    %c0_i32_2 = arith.constant 0 : i32
    return %c0_i32, %c0_i32_0, %c0_i32_1 : i32, i32, i32
  }
  func.func @transform_7(%arg0: i32) -> (i32, i32) {
    %c0_i32 = arith.constant 0 : i32
    %c0_i32_0 = arith.constant 0 : i32
    %c0_i32_1 = arith.constant 0 : i32
    return %c0_i32, %c0_i32_0 : i32, i32
  }
  func.func @transform_8(%arg0: i32) -> (i32, i32) {
    %c0_i32 = arith.constant 0 : i32
    %c0_i32_0 = arith.constant 0 : i32
    %c0_i32_1 = arith.constant 0 : i32
    return %c0_i32, %c0_i32_0 : i32, i32
  }
  func.func @transform_9(%arg0: i32) -> (i32, i32) {
    %c0_i32 = arith.constant 0 : i32
    %c0_i32_0 = arith.constant 0 : i32
    return %c0_i32, %arg0 : i32, i32
  }
}

</mosaic_0001>

<bundles_post_ra>
// kernel: tpu_custom_call.1
= control target key start
LH: loop header
LB: loop body
LE: loop exit
PB: predicated region body
PF: predicated region fallthrough
CT: control target
= control target key end

     0   :  { %s1749_s0 = inlined_call_operand.vmem [shape: bf16[40,128], index: 0, kind: input, shape index: {}]   ;;  %s1750_s1 = inlined_call_operand.hbm [shape: f32[360,128], index: 1, kind: input, shape index: {}]   ;;  %s1751_s2 = inlined_call_operand.vmem [shape: f32[36,128], index: 2, kind: input, shape index: {}]   ;;  %s1752_s3 = inlined_call_operand.hbm [shape: bf16[4,360], index: 3, kind: input, shape index: {}]   ;;  %s1753_s4 = inlined_call_operand.vmem [shape: bf16[4,4,36], index: 4, kind: input, shape index: {}]   ;;  %s1754_s5 = inlined_call_operand.vmem [shape: f32[5,4,1], index: 5, kind: input, shape index: {}]   ;;  %s1755_s6 = inlined_call_operand.vmem [shape: f32[5,4,1], index: 6, kind: input, shape index: {}]   ;;  %s1756_s7 = inlined_call_operand.vmem [shape: f32[4,1], index: 7, kind: input, shape index: {}]   ;;  %s1757_s8 = inlined_call_operand.<no memory space> [shape: f32[1,1], index: 8, kind: input, shape index: {}]   ;;  %s1758_s9 = inlined_call_operand.hbm [shape: f32[1,128], index: 9, kind: output, shape index: {}]  }
   0x1   :  { %v14_v0 = vstv %s1757_s8 }
   0x2   :  { %15 = vst [vmem:[#allocation4] sm:$0x1] %v14_v0 }
   0x3   :  { %16 = vsyncpa [#allocation6], 0 }
   0x4   :  { %17 = vsyncpa [#allocation9], 0 }
   0x5   :  { %18 = vsyncpa [#allocation7], 0  ;;  %s1371_s11 = smov [#allocation5]   ;;  %s1299_s15 = scalar_lea.hbm %s1750_s1, 5760 }
   0x6   :  { %s26_s12 = sshll.u32 %s1371_s11, 4  ;;  %p1300_p0 = scmp.ne.s32.totalorder %s1750_s1, %s1299_s15  ;;  %s27_s12 = int_to_ptr.vmem [resolvable:$true] %s26_s12 }
   0x7   :  { %p1303_p1 = scmp.lt.u32.totalorder %s1299_s15, %s1750_s1 }
   0x9   :  { %p1305_p2 = pnand %p1303_p1, %p1300_p0 }
   0xb   :  { %1308 = shalt.err (!%p1305_p2)
}
   0xc   :  { %s1309_s8 = scalar_lea.vmem %s27_s12, 5760  ;;  %p1314_p4 = scmp.lt.s32.totalorder %s27_s12, %s27_s12 }
   0xd   :  { %p1310_p3 = scmp.ne.s32.totalorder %s27_s12, %s1309_s8  ;;  %p1315_p5 = scmp.lt.s32.totalorder %s1309_s8, %s1309_s8 }
   0xf   :  { %p1316_p6 = por %p1315_p5, %p1314_p4 }
  0x11   :  { %p1317_p7 = pnand %p1316_p6, %p1310_p3 }
  0x13   :  { %1320 = shalt.err (!%p1317_p7)
}
  0x14   :  { %s1372_s20 = smov 128   ;;  %s1373_s21 = smov 8  }
  0x15   :  { %32 = dma.hbm_to_vmem [thread:$0]  %s1750_s1, 5760, %s27_s12, [#allocation6], %s1372_s20, %s1372_s20, %s1373_s21  }
  0x16   :  { %s1374_s24 = smov [#allocation8]   ;;  %s1321_s28 = scalar_lea.hbm %s1752_s3, 96 }
  0x17   :  { %s41_s25 = sshll.u32 %s1374_s24, 4  ;;  %p1322_p8 = scmp.ne.s32.totalorder %s1752_s3, %s1321_s28  ;;  %s42_s25 = int_to_ptr.vmem [resolvable:$true] %s41_s25 }
  0x18   :  { %p1325_p9 = scmp.lt.u32.totalorder %s1321_s28, %s1752_s3 }
  0x1a   :  { %p1327_p10 = pnand %p1325_p9, %p1322_p8 }
  0x1c   :  { %1330 = shalt.err (!%p1327_p10)
}
  0x1d   :  { %s1331_s13 = scalar_lea.vmem %s42_s25, 96  ;;  %p1336_p12 = scmp.lt.s32.totalorder %s42_s25, %s42_s25 }
  0x1e   :  { %p1332_p11 = scmp.ne.s32.totalorder %s42_s25, %s1331_s13  ;;  %p1337_p13 = scmp.lt.s32.totalorder %s1331_s13, %s1331_s13 }
  0x20   :  { %p1338_p0 = por %p1337_p13, %p1336_p12 }
  0x22   :  { %p1339_p1 = pnand %p1338_p0, %p1332_p11 }
  0x24   :  { %1342 = shalt.err (!%p1339_p1)
}
  0x25   :  { %44 = dma.hbm_to_vmem [thread:$0]  %s1752_s3, 96, %s42_s25, [#allocation9]  }
  0x26   :  { %1365 = dma.done.wait [#allocation6], 5760  }
  0x27   :  { %1366 = vsyncadd [#allocation6], 4294961536 }
  0x28   :  { %1367 = dma.done.wait [#allocation9], 96  }
  0x29   :  { %1368 = vsyncadd [#allocation9], 4294967200  ;;  %v1085_v1 = vld [vmem:[%s1749_s0 + $0x8] sm:$0xff]   ;;  %v66_v2 = vld [vmem:[%s1749_s0 + $0x10] sm:$0xf]  ;;  %s1375_s3 = smov 1   ;;  %v361_v26 = vlaneseq }
  0x2a   :  { %v1078_v3 = vld [vmem:[%s1749_s0] sm:$0xff]   ;;  %v1084_v4 = vunpack.c.h.bf16 %v1085_v1  ;;  %v1474_v5 = vunpack.c.l.bf16 %v66_v2  ;;  %v1083_v7 = vunpack.c.l.bf16 %v1085_v1  ;;  %v263_v13 = vld [vmem:[#allocation5 + $0xa0] sm:$0xff]  ;;  %v1376_v14 = vmov 0.0   ;;  %v264_v15 = vld [vmem:[#allocation5 + $0xa8] sm:$0xff]  ;;  %s1377_s0 = smov 9   ;;  %s1378_s8 = smov 121  }
  0x2b   :  { %v1080_v6 = vunpack.c.h.bf16 %v1078_v3  ;;  %v1079_v8 = vunpack.c.l.bf16 %v1078_v3  ;;  %1132 = vmatprep.subr.bf16.mxu1 %v1376_v14  ;;  %v265_v19 = vld [vmem:[#allocation5 + $0xb0] sm:$0xff]  ;;  %v266_v20 = vld [vmem:[#allocation5 + $0xb8] sm:$0xff]  ;;  %s1379_s20 = smov 120   ;;  %s1380_s22 = smov 127   ;;  %v1382_v24 = vmov 1983009808  }
  0x2c   :  { %v1216_v9 = vpack.i.bf16 %v1474_v5, %v1084_v4  ;;  %v1221_v11 = vpack.i.bf16 %v1084_v4, %v1083_v7  ;;  %v1488_v21 = vmul.f32 %v1083_v7, %v265_v19  ;;  %v1490_v22 = vmul.f32 %v1084_v4, %v266_v20  ;;  %s1381_s23 = smov 7   ;;  %s1383_s24 = smov 119   ;;  %v72_v30 = vld [vmem:[#allocation8] sm:$0x3f]  ;;  %v463_v36 = vld [vmem:[%s1754_s5] sm:$0xf] }
  0x2d   :  { %v1206_v10 = vpack.i.bf16 %v1083_v7, %v1080_v6  ;;  %v1211_v12 = vpack.i.bf16 %v1080_v6, %v1079_v8  ;;  %v1480_v16 = vmul.f32 %v1079_v8, %v263_v13  ;;  %v1482_v17 = vmul.f32 %v1080_v6, %v264_v15  ;;  %v464_v37 = vld [vmem:[%s1755_s6] sm:$0xf]  ;;  %v259_v40 = vld [vmem:[#allocation5 + $0x80] sm:$0xff]  ;;  %v260_v41 = vld [vmem:[#allocation5 + $0x88] sm:$0xff] }
  0x2e   :  { %1217 = vrot.lane.b32.xlu1 %v1216_v9, %s1375_s3  ;;  %v344_v23 = vpack.c.bf16 %v1490_v22, %v1488_v21  ;;  %v359_v25 = vunpack.c.l.s4 %v1382_v24  ;;  %v1510_v28 = vshrl.u32 %v361_v26, 7  ;;  %v357_v32 = vcombine.high %v72_v30, %v72_v30  ;;  %v261_v46 = vld [vmem:[#allocation5 + $0x90] sm:$0xff]  ;;  %v262_v47 = vld [vmem:[#allocation5 + $0x98] sm:$0xff]  ;;  %v243_v52 = vld [vmem:[#allocation5] sm:$0xff] }
  0x2f   :  { %1207 = vrot.lane.b32.xlu0 %v1206_v10, %s1375_s3  ;;  %v343_v18 = vpack.c.bf16 %v1482_v17, %v1480_v16  ;;  %vm1384_vm0 = vmmov 0   ;;  %v1385_v35 = vmov 0   ;;  %v244_v53 = vld [vmem:[#allocation5 + $0x8] sm:$0xff]  ;;  %v246_v54 = vld [vmem:[#allocation5 + $0x18] sm:$0xff]  ;;  %v245_v61 = vld [vmem:[#allocation5 + $0x10] sm:$0xff]  ;;  %vm379_vm1 = vcmask 1043456  }
  0x30   :  { %v360_v27 = vunpack.c.0.s8 %v359_v25  ;;  %1146 = vmatprep.mubr.msk.bf16.mxu1 %vm1384_vm0, %v1376_v14  ;;  %1286 = vset.pattern.permute.xlu0 %v1385_v35  ;;  %v275_v4 = vld [vmem:[#allocation5 + $0x100] sm:$0xff]  ;;  %v276_v6 = vld [vmem:[#allocation5 + $0x108] sm:$0xff]  ;;  %v281_v21 = vld [vmem:[#allocation5 + $0x130] sm:$0xff]  ;;  %vm375_vm2 = vcmask 850944   ;;  %vm548_vm3 = vcmask 1041408   ;;  %vm544_vm4 = vcmask 293888  }
  0x31   :  { %1287 = vset.pattern.permute.xlu1 %v1385_v35  ;;  %v248_v19 = vld [vmem:[#allocation5 + $0x28] sm:$0xff]  ;;  %v247_v24 = vld [vmem:[#allocation5 + $0x20] sm:$0xff] }
  0x32   :  { %1222 = vrot.lane.b32.xlu1 %v1221_v11, %s1377_s0  ;;  %v363_v29 = vsub.s32 %v360_v27, %v1510_v28  ;;  %v279_v17 = vld [vmem:[#allocation5 + $0x120] sm:$0xff] }
  0x33   :  { %1212 = vrot.lane.b32.xlu0 %v1211_v12, %s1377_s0 }
  0x34   :  { %v1516_v31 = vrot.slane %v72_v30, %v363_v29  ;;  %v1522_v34 = vrot.slane %v357_v32, %v363_v29 }
  0x36   :  { %81 = vrot.lane.b32.xlu1 %v1474_v5, %s1377_s0  ;;  %v372_v33 = vcombine.high %v1516_v31, %v1516_v31 }
  0x37   :  { %1227 = vrot.lane.b32.xlu0 %v1221_v11, %s1378_s8 }
  0x38   :  { %415 = vmatprep.mubr.bf16.mxu0 %v372_v33  ;;  %v250_v33 = vld [vmem:[#allocation5 + $0x38] sm:$0xff] }
  0x3a   :  { %161 = vrot.lane.b32.xlu1 %v1474_v5, %s1378_s8 }
  0x3b   :  { %1232 = vrot.lane.b32.xlu0 %v1211_v12, %s1373_s21 }
  0x3e   :  { %1242 = vrot.lane.b32.xlu1 %v1221_v11, %s1373_s21 }
  0x3f   :  { %1237 = vrot.lane.b32.xlu0 %v1211_v12, %s1379_s20 }
  0x42   :  { %1252 = vrot.lane.b32.xlu1 %v1221_v11, %s1379_s20 }
  0x43   :  { %1247 = vrot.lane.b32.xlu0 %v1211_v12, %s1380_s22 }
  0x46   :  { %1257 = vrot.lane.b32.xlu1 %v1221_v11, %s1380_s22 }
  0x47   :  { %96 = vrot.lane.b32.xlu0 %v1474_v5, %s1373_s21 }
  0x4a   :  { %1262 = vrot.lane.b32.xlu1 %v1211_v12, %s1381_s23 }
  0x4b   :  { %176 = vrot.lane.b32.xlu0 %v1474_v5, %s1379_s20 }
  0x4e   :  { %1267 = vrot.lane.b32.xlu1 %v1211_v12, %s1383_s24 }
  0x4f   :  { %146 = vrot.lane.b32.xlu0 %v1474_v5, %s1380_s22 }
  0x52   :  { %1277 = vrot.lane.b32.xlu1 %v1211_v12, %s1378_s8 }
  0x53   :  { %1272 = vrot.lane.b32.xlu0 %v1221_v11, %s1381_s23 }
  0x56   :  { %111 = vrot.lane.b32.xlu1 %v1474_v5, %s1381_s23 }
  0x57   :  { %1282 = vrot.lane.b32.xlu0 %v1221_v11, %s1383_s24 }
  0x5a   :  { %191 = vrot.lane.b32.xlu1 %v1474_v5, %s1383_s24 }
  0x5b   :  { %118 = vrot.lane.b32.xlu0 %v1079_v8, %s1375_s3 }
  0x5e   :  { %495 = vperm.xlu1 %1287, %v464_v37  }
  0x5f   :  { %489 = vperm.xlu0 %1286, %v463_v36   ;;  %v278_v36 = vld [vmem:[#allocation5 + $0x118] sm:$0xff] }
  0xa0   :  { %v1218_v38 = vpop.permute.xlu1 %1217 }
  0xa1   :  { %v1208_v39 = vpop.permute.xlu0 %1207  ;;  %v1220_v44 = vunpack.i.h.bf16 %v1218_v38  ;;  %v1219_v45 = vunpack.i.l.bf16 %v1218_v38  ;;  %v277_v38 = vld [vmem:[#allocation5 + $0x110] sm:$0xff] }
  0xa2   :  { %v1210_v42 = vunpack.i.h.bf16 %v1208_v39  ;;  %v1209_v43 = vunpack.i.l.bf16 %v1208_v39  ;;  %v249_v39 = vld [vmem:[#allocation5 + $0x30] sm:$0xff] }
  0xa3   :  { %v307_v59 = vmul.f32 %v1220_v44, %v262_v47  ;;  %v306_v60 = vmul.f32 %v1219_v45, %v261_v46 }
  0xa4   :  { %v304_v48 = vmul.f32 %v1209_v43, %v259_v40  ;;  %v305_v49 = vmul.f32 %v1210_v42, %v260_v41  ;;  %v1223_v50 = vpop.permute.xlu1 %1222  ;;  %v267_v43 = vld [vmem:[#allocation5 + $0xc0] sm:$0xff] }
  0xa5   :  { %v1213_v51 = vpop.permute.xlu0 %1212  ;;  %v1225_v55 = vunpack.i.h.bf16 %v1223_v50  ;;  %v1224_v56 = vunpack.i.l.bf16 %v1223_v50  ;;  %v342_v11 = vpack.c.bf16 %v307_v59, %v306_v60 }
  0xa6   :  { %v1215_v57 = vunpack.i.h.bf16 %v1213_v51  ;;  %v1214_v58 = vunpack.i.l.bf16 %v1213_v51  ;;  %v341_v62 = vpack.c.bf16 %v305_v49, %v304_v48  ;;  %v280_v49 = vld [vmem:[#allocation5 + $0x128] sm:$0xff] }
  0xa7   :  { %v291_v1 = vmul.f32 %v1225_v55, %v246_v54  ;;  %v290_v7 = vmul.f32 %v1224_v56, %v245_v61  ;;  %v268_v51 = vld [vmem:[#allocation5 + $0xc8] sm:$0xff]  ;;  %v312_v54 = vmul.f32 %v267_v43, %v1474_v5  ;;  %v251_v55 = vld [vmem:[#allocation5 + $0x40] sm:$0xff] }
  0xa8   :  { %v288_v63 = vmul.f32 %v1214_v58, %v243_v52  ;;  %v289_v0 = vmul.f32 %v1215_v57, %v244_v53  ;;  %1086 = vmatprep.subr.bf16.mxu0 %v341_v62  ;;  %v82_v2 = vpop.permute.xlu1 %81  ;;  %v252_v58 = vld [vmem:[#allocation5 + $0x48] sm:$0xff] }
  0xa9   :  { %v1228_v3 = vpop.permute.xlu0 %1227  ;;  %v334_v26 = vpack.c.bf16 %v291_v1, %v290_v7  ;;  %v292_v30 = vmul.f32 %v247_v24, %v82_v2  ;;  %v270_v1 = vld [vmem:[#allocation5 + $0xd8] sm:$0xff]  ;;  %v271_v24 = vld [vmem:[#allocation5 + $0xe0] sm:$0xff] }
  0xaa   :  { %v1230_v8 = vunpack.i.h.bf16 %v1228_v3  ;;  %v1229_v9 = vunpack.i.l.bf16 %v1228_v3  ;;  %v333_v10 = vpack.c.bf16 %v289_v0, %v288_v63  ;;  %v269_v0 = vld [vmem:[#allocation5 + $0xd0] sm:$0xff]  ;;  %v282_v7 = vld [vmem:[#allocation5 + $0x138] sm:$0xff] }
  0xac   :  { %1087 = vmatpush3.bf16.msra.mxu0 %v333_v10  ;;  %v320_v12 = vmul.f32 %v1229_v9, %v275_v4  ;;  %v321_v13 = vmul.f32 %v1230_v8, %v276_v6  ;;  %v162_v15 = vpop.permute.xlu1 %161 }
  0xad   :  { %v1233_v20 = vpop.permute.xlu0 %1232  ;;  %1088 = vmatprep.subr.bf16.mxu0 %v342_v11  ;;  %v322_v46 = vmul.f32 %v277_v38, %v162_v15  ;;  %v253_v15 = vld [vmem:[#allocation5 + $0x50] sm:$0xff]  ;;  %v283_v38 = vld [vmem:[#allocation5 + $0x140] sm:$0xff] }
  0xae   :  { %v1234_v25 = vunpack.i.l.bf16 %v1233_v20  ;;  %v349_v27 = vpack.c.bf16 %v321_v13, %v320_v12  ;;  %v1235_v32 = vunpack.i.h.bf16 %v1233_v20 }
  0xb0   :  { %v293_v29 = vmul.f32 %v1234_v25, %v248_v19  ;;  %1089 = vmatpush3.bf16.msra.mxu0 %v334_v26  ;;  %1133 = vmatpush3.bf16.msra.mxu1 %v349_v27  ;;  %v1243_v35 = vpop.permute.xlu1 %1242  ;;  %v294_v47 = vmul.f32 %v1235_v32, %v249_v39  ;;  %v254_v19 = vld [vmem:[#allocation5 + $0x58] sm:$0xff]  ;;  %v284_v39 = vld [vmem:[#allocation5 + $0x148] sm:$0xff] }
  0xb1   :  { %v1238_v37 = vpop.permute.xlu0 %1237  ;;  %1090 = vmatprep.subr.bf16.mxu0 %v343_v18  ;;  %1134 = vmatprep.subr.bf16.mxu1 %v1376_v14  ;;  %v1244_v40 = vunpack.i.l.bf16 %v1243_v35  ;;  %v1245_v16 = vunpack.i.h.bf16 %v1243_v35 }
  0xb2   :  { %v1239_v41 = vunpack.i.l.bf16 %v1238_v37  ;;  %v335_v42 = vpack.c.bf16 %v293_v29, %v292_v30  ;;  %v1240_v48 = vunpack.i.h.bf16 %v1238_v37  ;;  %v272_v30 = vld [vmem:[#allocation5 + $0xe8] sm:$0xff] }
  0xb3   :  { %v295_v44 = vmul.f32 %v1244_v40, %v250_v33  ;;  %v296_v4 = vmul.f32 %v1245_v16, %v251_v55 }
  0xb4   :  { %v323_v45 = vmul.f32 %v1239_v41, %v278_v36  ;;  %1091 = vmatpush3.bf16.msra.mxu0 %v335_v42  ;;  %v1253_v50 = vpop.permute.xlu1 %1252  ;;  %v324_v62 = vmul.f32 %v1240_v48, %v279_v17  ;;  %v255_v48 = vld [vmem:[#allocation5 + $0x60] sm:$0xff] }
  0xb5   :  { %v1248_v52 = vpop.permute.xlu0 %1247  ;;  %v1254_v18 = vunpack.i.l.bf16 %v1253_v50  ;;  %1092 = vmatprep.subr.bf16.mxu0 %v344_v23  ;;  %v336_v56 = vpack.c.bf16 %v295_v44, %v294_v47  ;;  %v1255_v63 = vunpack.i.h.bf16 %v1253_v50 }
  0xb6   :  { %v1249_v53 = vunpack.i.l.bf16 %v1248_v52  ;;  %v350_v57 = vpack.c.bf16 %v323_v45, %v322_v46  ;;  %v1250_v60 = vunpack.i.h.bf16 %v1248_v52  ;;  %v274_v52 = vld [vmem:[#allocation5 + $0xf8] sm:$0xff] }
  0xb7   :  { %v325_v59 = vmul.f32 %v1254_v18, %v280_v49  ;;  %v326_v11 = vmul.f32 %v1255_v63, %v281_v21  ;;  %v256_v49 = vld [vmem:[#allocation5 + $0x68] sm:$0xff]  ;;  %v287_v21 = vld [vmem:[#allocation5 + $0x160] sm:$0xff] }
  0xb8   :  { %v313_v61 = vmul.f32 %v1249_v53, %v268_v51  ;;  %1093 = vmatpush3.bf16.msra.mxu0 %v336_v56  ;;  %1135 = vmatpush3.bf16.msra.mxu1 %v350_v57  ;;  %v1258_v2 = vpop.permute.xlu1 %1257  ;;  %v314_v8 = vmul.f32 %v1250_v60, %v269_v0  ;;  %v273_v51 = vld [vmem:[#allocation5 + $0xf0] sm:$0xff] }
  0xb9   :  { %v97_v3 = vpop.permute.xlu0 %96  ;;  %v1259_v22 = vunpack.i.l.bf16 %v1258_v2  ;;  %1136 = vmatprep.subr.bf16.mxu1 %v1376_v14  ;;  %v351_v6 = vpack.c.bf16 %v325_v59, %v324_v62  ;;  %v1260_v12 = vunpack.i.h.bf16 %v1258_v2  ;;  %v285_v60 = vld [vmem:[#allocation5 + $0x150] sm:$0xff] }
  0xba   :  { %v297_v23 = vmul.f32 %v252_v58, %v97_v3  ;;  %v345_v5 = vpack.c.bf16 %v313_v61, %v312_v54  ;;  %v286_v61 = vld [vmem:[#allocation5 + $0x158] sm:$0xff]  ;;  %v257_v3 = vld [vmem:[#allocation5 + $0x70] sm:$0xff] }
  0xbb   :  { %v315_v9 = vmul.f32 %v1259_v22, %v270_v1  ;;  %v316_v36 = vmul.f32 %v1260_v12, %v271_v24 }
  0xbc   :  { %v337_v10 = vpack.c.bf16 %v297_v23, %v296_v4  ;;  %1094 = vmatprep.subr.bf16.mxu0 %v345_v5  ;;  %1137 = vmatpush3.bf16.msra.mxu1 %v351_v6  ;;  %v1263_v20 = vpop.permute.xlu1 %1262  ;;  %v258_v4 = vld [vmem:[#allocation5 + $0x78] sm:$0xff] }
  0xbd   :  { %v177_v13 = vpop.permute.xlu0 %176  ;;  %v1265_v26 = vunpack.i.h.bf16 %v1263_v20  ;;  %v1264_v27 = vunpack.i.l.bf16 %v1263_v20  ;;  %v346_v29 = vpack.c.bf16 %v315_v9, %v314_v8  ;;  %1138 = vmatprep.subr.bf16.mxu1 %v1376_v14 }
  0xbe   :  { %v327_v25 = vmul.f32 %v282_v7, %v177_v13  ;;  %1095 = vmatpush3.bf16.msra.mxu0 %v337_v10 }
  0xbf   :  { %v299_v33 = vmul.f32 %v1265_v26, %v254_v19  ;;  %v298_v35 = vmul.f32 %v1264_v27, %v253_v15  ;;  %1096 = vmatprep.subr.bf16.mxu0 %v346_v29 }
  0xc0   :  { %v352_v32 = vpack.c.bf16 %v327_v25, %v326_v11  ;;  %v1268_v40 = vpop.permute.xlu1 %1267 }
  0xc1   :  { %v147_v37 = vpop.permute.xlu0 %146  ;;  %v1270_v42 = vunpack.i.h.bf16 %v1268_v40  ;;  %v1269_v43 = vunpack.i.l.bf16 %v1268_v40  ;;  %v338_v44 = vpack.c.bf16 %v299_v33, %v298_v35 }
  0xc2   :  { %v317_v41 = vmul.f32 %v272_v30, %v147_v37  ;;  %1139 = vmatpush3.bf16.msra.mxu1 %v352_v32 }
  0xc3   :  { %1140 = vmatprep.subr.bf16.mxu1 %v1376_v14  ;;  %v329_v46 = vmul.f32 %v1270_v42, %v284_v39  ;;  %v328_v47 = vmul.f32 %v1269_v43, %v283_v38  ;;  %1097 = vmatpush3.bf16.msra.mxu0 %v338_v44 }
  0xc4   :  { %v347_v45 = vpack.c.bf16 %v317_v41, %v316_v36  ;;  %v1278_v16 = vpop.permute.xlu1 %1277 }
  0xc5   :  { %v1273_v50 = vpop.permute.xlu0 %1272  ;;  %v1280_v53 = vunpack.i.h.bf16 %v1278_v16  ;;  %v1279_v54 = vunpack.i.l.bf16 %v1278_v16  ;;  %v353_v55 = vpack.c.bf16 %v329_v46, %v328_v47 }
  0xc6   :  { %v1275_v17 = vunpack.i.h.bf16 %v1273_v50  ;;  %v1274_v18 = vunpack.i.l.bf16 %v1273_v50  ;;  %1098 = vmatprep.subr.bf16.mxu0 %v347_v45 }
  0xc7   :  { %v319_v58 = vmul.f32 %v1280_v53, %v274_v52  ;;  %v318_v59 = vmul.f32 %v1279_v54, %v273_v51  ;;  %1141 = vmatpush3.bf16.msra.mxu1 %v353_v55 }
  0xc8   :  { %v301_v56 = vmul.f32 %v1275_v17, %v256_v49  ;;  %v300_v57 = vmul.f32 %v1274_v18, %v255_v48  ;;  %v112_v63 = vpop.permute.xlu1 %111  ;;  %1142 = vmatprep.subr.bf16.mxu1 %v1376_v14 }
  0xc9   :  { %v1283_v62 = vpop.permute.xlu0 %1282  ;;  %v348_v22 = vpack.c.bf16 %v319_v58, %v318_v59  ;;  %v302_v8 = vmul.f32 %v257_v3, %v112_v63 }
  0xca   :  { %v1285_v0 = vunpack.i.h.bf16 %v1283_v62  ;;  %v1284_v1 = vunpack.i.l.bf16 %v1283_v62  ;;  %v339_v2 = vpack.c.bf16 %v301_v56, %v300_v57  ;;  %v1064_v56 = vld [vmem:[%s1755_s6 + $0x4] sm:$0xf] }
  0xcb   :  { %v1063_v57 = vld [vmem:[%s1754_s5 + $0x4] sm:$0xf] }
  0xcc   :  { %v331_v23 = vmul.f32 %v1285_v0, %v286_v61  ;;  %v330_v5 = vmul.f32 %v1284_v1, %v285_v60  ;;  %1099 = vmatpush3.bf16.msra.mxu0 %v339_v2  ;;  %v192_v7 = vpop.permute.xlu1 %191  ;;  %v1590_v1 = vld [vmem:[%s1751_s2] sm:$0xff]  ;;  %v1595_v2 = vld [vmem:[%s1751_s2 + $0x8] sm:$0xff] }
  0xcd   :  { %v119_v6 = vpop.permute.xlu0 %118  ;;  %1100 = vmatprep.subr.bf16.mxu0 %v348_v22  ;;  %v332_v10 = vmul.f32 %v287_v21, %v192_v7 }
  0xce   :  { %v303_v9 = vmul.f32 %v258_v4, %v119_v6  ;;  %v354_v11 = vpack.c.bf16 %v331_v23, %v330_v5  ;;  %v1602_v6 = vld [vmem:[%s1751_s2 + $0x10] sm:$0xff] }
  0xcf   :  { %v355_v13 = vpack.c.bf16 %v332_v10, %v332_v10 }
  0xd0   :  { %v340_v12 = vpack.c.bf16 %v303_v9, %v302_v8  ;;  %1143 = vmatpush3.bf16.msra.mxu1 %v354_v11  ;;  %v1608_v8 = vld [vmem:[%s1751_s2 + $0x18] sm:$0xff]  ;;  %v535_v9 = vld [vmem:[%s1751_s2 + $0x20] sm:$0xf] }
  0xd1   :  { %1144 = vmatprep.subr.bf16.mxu1 %v1376_v14  ;;  %v381_v15 = vsel %vm379_vm1, %v355_v13, 0 }
  0xd2   :  { %1101 = vmatpush3.bf16.msra.mxu0 %v340_v12 }
  0xd3   :  { %1160 = vmatprep.subr.bf16.mxu0 %v1376_v14 }
  0xd4   :  { %1145 = vmatpush3.bf16.msra.mxu1 %v381_v15 }
  0xd5   :  { %416 = vmatmul.mubr.bf16.vlgmr.msra.gmra.mrb[0].mxu0 %v1516_v31  ;;  %1150 = vmatprep.subr.bf16.mxu1 %v1376_v14 }
  0xd6   :  { %1166 = vmatprep.mubr.msk.bf16.mxu0 %vm1384_vm0, %v1376_v14 }
  0xd7   :  { %1147 = vmatmul.mubr.msk.bf16.vlgmr.msra.gmra.mrb[0].mxu1 %vm375_vm2, %v1522_v34 }
  0xd8   :  { %1156 = vmatprep.mubr.msk.bf16.mxu1 %vm1384_vm0, %v1376_v14 }
  0xdd   :  { %v496_v18 = vpop.permute.xlu1 %495 }
  0xde   :  { %v490_v16 = vpop.permute.xlu0 %489 }
 0x1a8   :  { %v1102_v19 = vpop.f32.mrb[0].mxu0 }
 0x1a9   :  { %v1103_v20 = vpop.f32.mrb[1].mxu0 }
 0x1aa   :  { %v1104_v24 = vadd.f32 %v1103_v20, %v1102_v19  ;;  %v1105_v25 = vpop.f32.mrb[2].mxu0  ;;  %v457_v26 = vpop.f32.mrb[0].mxu1 }
 0x1ab   :  { %v1106_v27 = vpop.f32.mrb[3].mxu0  ;;  %v1148_v29 = vpop.f32.mrb[1].mxu1  ;;  %v500_v25 = vld [vmem:[%s1753_s4] sm:$0x3] }
 0x1ac   :  { %v458_v30 = vadd.f32 %v1104_v24, %v457_v26  ;;  %v460_v32 = vpop.f32.mrb[2].mxu1 }
 0x1ad   :  { %v1149_v31 = vpop.f32.mrb[3].mxu1 }
 0x1ae   :  { %v465_v33 = vsel %vm379_vm1, %v458_v30, 0.0 }
 0x1af   :  { %v466_v35 = vrot.slane %v465_v33, 4 }
 0x1b1   :  { %v467_v36 = vadd.f32 %v466_v35, %v465_v33 }
 0x1b3   :  { %v468_v37 = vrot.slane %v467_v36, 2 }
 0x1b5   :  { %v469_v38 = vadd.f32 %v468_v37, %v467_v36 }
 0x1b7   :  { %v470_v34 = vrot.slane %v469_v38, 1 }
 0x1b9   :  { %v471_v39 = vadd.f32 %v470_v34, %v469_v38 }
 0x1bb   :  { %v473_v40 = vmul.f32 0.25, %v471_v39 }
 0x1bd   :  { %v474_v41 = vsub.f32 %v458_v30, %v473_v40 }
 0x1bf   :  { %v475_v42 = vmul.f32 %v474_v41, %v474_v41 }
 0x1c1   :  { %v476_v43 = vsel %vm379_vm1, %v475_v42, 0.0 }
 0x1c2   :  { %v477_v44 = vrot.slane %v476_v43, 4 }
 0x1c4   :  { %v478_v45 = vadd.f32 %v477_v44, %v476_v43 }
 0x1c6   :  { %v479_v46 = vrot.slane %v478_v45, 2 }
 0x1c8   :  { %v480_v47 = vadd.f32 %v479_v46, %v478_v45 }
 0x1ca   :  { %v481_v48 = vrot.slane %v480_v47, 1 }
 0x1cc   :  { %v482_v49 = vadd.f32 %v481_v48, %v480_v47 }
 0x1ce   :  { %v483_v50 = vmul.f32 0.25, %v482_v49 }
 0x1d0   :  { %v484_v51 = vadd.f32 1e-05, %v483_v50 }
 0x1d2   :  { %1289 = vrsqrt.f32 %v484_v51 }
 0x1dc   :  { %v1290_v52 = vpop.eup %1289 }
 0x1dd   :  { %v486_v17 = vmul.f32 %v1290_v52, %v474_v41 }
 0x1df   :  { %v492_v53 = vmul.f32 %v490_v16, %v486_v17 }
 0x1e1   :  { %v498_v54 = vadd.f32 %v496_v18, %v492_v53 }
 0x1e3   :  { %v1562_v55 = vmax.f32 %v498_v54, 0.0  ;;  %v1068_v54 = vld [vmem:[%s1755_s6 + $0x8] sm:$0xf] }
 0x1e5   :  { %513 = vst [vmem:[#allocation3 + $0x10] sm:$0xf] %v1562_v55  ;;  %504 = vrot.lane.b32.xlu0 %v1562_v55, %s1373_s21  ;;  %501 = vrot.lane.b32.xlu1 %v1562_v55, %s1377_s0 }
 0x1e9   :  { %510 = vrot.lane.b32.xlu0 %v1562_v55, %s1375_s3  ;;  %507 = vrot.lane.b32.xlu1 %v1562_v55, %s1381_s23 }
 0x1ed   :  { %517 = vrot.lane.b32.xlu0 %v1562_v55, %s1378_s8  ;;  %514 = vrot.lane.b32.xlu1 %v1562_v55, %s1380_s22 }
 0x1f1   :  { %523 = vrot.lane.b32.xlu0 %v1562_v55, %s1383_s24  ;;  %520 = vrot.lane.b32.xlu1 %v1562_v55, %s1379_s20 }
 0x1f5   :  { %625 = vperm.xlu0 %1286, %v1064_v56   ;;  %619 = vperm.xlu1 %1287, %v1063_v57   ;;  %v1067_v56 = vld [vmem:[%s1754_s5 + $0x8] sm:$0xf] }
 0x257   :  { %v505_v58 = vpop.permute.xlu0 %504  ;;  %v502_v59 = vpop.permute.xlu1 %501 }
 0x258   :  { %506 = vst [vmem:[#allocation3 + $0x4] sm:$0xf] %v505_v58  ;;  %503 = vst [vmem:[#allocation3] sm:$0xf] %v502_v59 }
 0x25b   :  { %v511_v60 = vpop.permute.xlu0 %510  ;;  %v508_v61 = vpop.permute.xlu1 %507 }
 0x25c   :  { %512 = vst [vmem:[#allocation3 + $0xc] sm:$0xf] %v511_v60  ;;  %509 = vst [vmem:[#allocation3 + $0x8] sm:$0xf] %v508_v61 }
 0x25f   :  { %v518_v62 = vpop.permute.xlu0 %517  ;;  %v515_v63 = vpop.permute.xlu1 %514  ;;  %v526_v0 = vld [vmem:[#allocation3] sm:$0xff] }
 0x260   :  { %519 = vst [vmem:[#allocation3 + $0x18] sm:$0xf] %v518_v62  ;;  %516 = vst [vmem:[#allocation3 + $0x14] sm:$0xf] %v515_v63  ;;  %v536_v22 = vmul.f32 %v1590_v1, %v526_v0 }
 0x263   :  { %v524_v3 = vpop.permute.xlu0 %523  ;;  %v521_v4 = vpop.permute.xlu1 %520  ;;  %v527_v21 = vld [vmem:[#allocation3 + $0x8] sm:$0xff] }
 0x264   :  { %525 = vst [vmem:[#allocation3 + $0x20] sm:$0xf] %v524_v3  ;;  %522 = vst [vmem:[#allocation3 + $0x1c] sm:$0xf] %v521_v4  ;;  %v537_v23 = vmul.f32 %v1595_v2, %v527_v21 }
 0x266   :  { %v541_v5 = vpack.c.bf16 %v537_v23, %v536_v22 }
 0x267   :  { %v528_v7 = vld [vmem:[#allocation3 + $0x10] sm:$0xff] }
 0x268   :  { %1151 = vmatpush3.bf16.msra.mxu1 %v541_v5  ;;  %v538_v12 = vmul.f32 %v1602_v6, %v528_v7  ;;  %v666_v7 = vld [vmem:[%s1751_s2 + $0x20] sm:$0xf] }
 0x269   :  { %1152 = vmatprep.subr.bf16.mxu1 %v1376_v14 }
 0x26b   :  { %v529_v10 = vld [vmem:[#allocation3 + $0x18] sm:$0xff]  ;;  %v530_v11 = vld [vmem:[#allocation3 + $0x20] sm:$0xf] }
 0x26c   :  { %v539_v13 = vmul.f32 %v1608_v8, %v529_v10  ;;  %v540_v15 = vmul.f32 %v535_v9, %v530_v11 }
 0x26e   :  { %v542_v19 = vpack.c.bf16 %v539_v13, %v538_v12  ;;  %v543_v20 = vpack.c.bf16 %v540_v15, %v540_v15 }
 0x270   :  { %1153 = vmatpush3.bf16.msra.mxu1 %v542_v19  ;;  %v550_v24 = vsel %vm548_vm3, %v543_v20, 0 }
 0x271   :  { %1154 = vmatprep.subr.bf16.mxu1 %v1376_v14 }
 0x274   :  { %1155 = vmatpush3.bf16.msra.mxu1 %v550_v24  ;;  %v620_v52 = vpop.permute.xlu1 %619  ;;  %v626_v17 = vpop.permute.xlu0 %625  ;;  %v1065_v24 = vld [vmem:[%s1753_s4 + $0x2] sm:$0x3] }
 0x275   :  { %1170 = vmatprep.subr.bf16.mxu1 %v1376_v14 }
 0x277   :  { %1157 = vmatmul.mubr.msk.bf16.vlgmr.msra.gmra.mrb[4].mxu1 %vm544_vm4, %v500_v25 }
 0x278   :  { %1176 = vmatprep.mubr.msk.bf16.mxu1 %vm1384_vm0, %v1376_v14 }
 0x34a   :  { %v586_v26 = vpop.f32.mrb[4].mxu1 }
 0x34b   :  { %v596_v27 = vsel %vm379_vm1, %v586_v26, 0.0  ;;  %v1158_v29 = vpop.f32.mrb[5].mxu1 }
 0x34c   :  { %v597_v30 = vrot.slane %v596_v27, 4  ;;  %v589_v32 = vpop.f32.mrb[6].mxu1 }
 0x34d   :  { %v1159_v31 = vpop.f32.mrb[7].mxu1 }
 0x34e   :  { %v598_v33 = vadd.f32 %v597_v30, %v596_v27 }
 0x350   :  { %v599_v35 = vrot.slane %v598_v33, 2 }
 0x352   :  { %v600_v36 = vadd.f32 %v599_v35, %v598_v33 }
 0x354   :  { %v601_v37 = vrot.slane %v600_v36, 1 }
 0x356   :  { %v602_v38 = vadd.f32 %v601_v37, %v600_v36 }
 0x358   :  { %v603_v34 = vmul.f32 0.25, %v602_v38 }
 0x35a   :  { %v604_v39 = vsub.f32 %v586_v26, %v603_v34 }
 0x35c   :  { %v605_v40 = vmul.f32 %v604_v39, %v604_v39 }
 0x35e   :  { %v606_v41 = vsel %vm379_vm1, %v605_v40, 0.0 }
 0x35f   :  { %v607_v42 = vrot.slane %v606_v41, 4 }
 0x361   :  { %v608_v43 = vadd.f32 %v607_v42, %v606_v41 }
 0x363   :  { %v609_v44 = vrot.slane %v608_v43, 2 }
 0x365   :  { %v610_v45 = vadd.f32 %v609_v44, %v608_v43 }
 0x367   :  { %v611_v46 = vrot.slane %v610_v45, 1 }
 0x369   :  { %v612_v47 = vadd.f32 %v611_v46, %v610_v45 }
 0x36b   :  { %v613_v48 = vmul.f32 0.25, %v612_v47 }
 0x36d   :  { %v614_v49 = vadd.f32 1e-05, %v613_v48 }
 0x36f   :  { %1291 = vrsqrt.f32 %v614_v49 }
 0x379   :  { %v1292_v50 = vpop.eup %1291 }
 0x37a   :  { %v616_v51 = vmul.f32 %v1292_v50, %v604_v39 }
 0x37c   :  { %v622_v16 = vmul.f32 %v620_v52, %v616_v51 }
 0x37e   :  { %v628_v18 = vadd.f32 %v626_v17, %v622_v16 }
 0x380   :  { %v629_v53 = vmax.f32 %v628_v18, 0.0 }
 0x382   :  { %644 = vst [vmem:[#allocation3 + $0x10] sm:$0xf] %v629_v53  ;;  %635 = vrot.lane.b32.xlu0 %v629_v53, %s1373_s21  ;;  %632 = vrot.lane.b32.xlu1 %v629_v53, %s1377_s0 }
 0x386   :  { %641 = vrot.lane.b32.xlu0 %v629_v53, %s1375_s3  ;;  %638 = vrot.lane.b32.xlu1 %v629_v53, %s1381_s23 }
 0x38a   :  { %648 = vrot.lane.b32.xlu0 %v629_v53, %s1378_s8  ;;  %645 = vrot.lane.b32.xlu1 %v629_v53, %s1380_s22 }
 0x38e   :  { %654 = vrot.lane.b32.xlu0 %v629_v53, %s1383_s24  ;;  %651 = vrot.lane.b32.xlu1 %v629_v53, %s1379_s20 }
 0x392   :  { %754 = vperm.xlu0 %1286, %v1068_v54   ;;  %748 = vperm.xlu1 %1287, %v1067_v56   ;;  %v1071_v54 = vld [vmem:[%s1754_s5 + $0xc] sm:$0xf] }
 0x3f4   :  { %v636_v57 = vpop.permute.xlu0 %635  ;;  %v633_v58 = vpop.permute.xlu1 %632 }
 0x3f5   :  { %637 = vst [vmem:[#allocation3 + $0x4] sm:$0xf] %v636_v57  ;;  %634 = vst [vmem:[#allocation3] sm:$0xf] %v633_v58 }
 0x3f8   :  { %v642_v59 = vpop.permute.xlu0 %641  ;;  %v639_v60 = vpop.permute.xlu1 %638 }
 0x3f9   :  { %643 = vst [vmem:[#allocation3 + $0xc] sm:$0xf] %v642_v59  ;;  %640 = vst [vmem:[#allocation3 + $0x8] sm:$0xf] %v639_v60 }
 0x3fc   :  { %v649_v61 = vpop.permute.xlu0 %648  ;;  %v646_v62 = vpop.permute.xlu1 %645  ;;  %v657_v63 = vld [vmem:[#allocation3] sm:$0xff] }
 0x3fd   :  { %650 = vst [vmem:[#allocation3 + $0x18] sm:$0xf] %v649_v61  ;;  %647 = vst [vmem:[#allocation3 + $0x14] sm:$0xf] %v646_v62  ;;  %v667_v21 = vmul.f32 %v657_v63, %v1590_v1 }
 0x400   :  { %v655_v0 = vpop.permute.xlu0 %654  ;;  %v652_v3 = vpop.permute.xlu1 %651  ;;  %v658_v4 = vld [vmem:[#allocation3 + $0x8] sm:$0xff] }
 0x401   :  { %656 = vst [vmem:[#allocation3 + $0x20] sm:$0xf] %v655_v0  ;;  %653 = vst [vmem:[#allocation3 + $0x1c] sm:$0xf] %v652_v3  ;;  %v668_v22 = vmul.f32 %v658_v4, %v1595_v2 }
 0x403   :  { %v672_v23 = vpack.c.bf16 %v668_v22, %v667_v21 }
 0x404   :  { %v659_v5 = vld [vmem:[#allocation3 + $0x10] sm:$0xff] }
 0x405   :  { %1161 = vmatpush3.bf16.msra.mxu0 %v672_v23  ;;  %v669_v11 = vmul.f32 %v659_v5, %v1602_v6  ;;  %v796_v5 = vld [vmem:[%s1751_s2 + $0x20] sm:$0xf] }
 0x406   :  { %1162 = vmatprep.subr.bf16.mxu0 %v1376_v14 }
 0x408   :  { %v660_v9 = vld [vmem:[#allocation3 + $0x18] sm:$0xff]  ;;  %v661_v10 = vld [vmem:[#allocation3 + $0x20] sm:$0xf] }
 0x409   :  { %v670_v12 = vmul.f32 %v660_v9, %v1608_v8  ;;  %v671_v13 = vmul.f32 %v666_v7, %v661_v10 }
 0x40b   :  { %v673_v15 = vpack.c.bf16 %v670_v12, %v669_v11  ;;  %v674_v19 = vpack.c.bf16 %v671_v13, %v671_v13 }
 0x40d   :  { %1163 = vmatpush3.bf16.msra.mxu0 %v673_v15  ;;  %v679_v20 = vsel %vm548_vm3, %v674_v19, 0 }
 0x40e   :  { %1164 = vmatprep.subr.bf16.mxu0 %v1376_v14 }
 0x411   :  { %1165 = vmatpush3.bf16.msra.mxu0 %v679_v20  ;;  %v749_v51 = vpop.permute.xlu1 %748  ;;  %v755_v16 = vpop.permute.xlu0 %754  ;;  %v1069_v20 = vld [vmem:[%s1753_s4 + $0x4] sm:$0x3] }
 0x412   :  { %1180 = vmatprep.subr.bf16.mxu0 %v1376_v14 }
 0x414   :  { %1167 = vmatmul.mubr.msk.bf16.vlgmr.msra.gmra.mrb[4].mxu0 %vm544_vm4, %v1065_v24 }
 0x415   :  { %1186 = vmatprep.mubr.msk.bf16.mxu0 %vm1384_vm0, %v1376_v14 }
 0x4e7   :  { %v715_v25 = vpop.f32.mrb[4].mxu0 }
 0x4e8   :  { %v725_v26 = vsel %vm379_vm1, %v715_v25, 0.0  ;;  %v1168_v27 = vpop.f32.mrb[5].mxu0 }
 0x4e9   :  { %v726_v29 = vrot.slane %v725_v26, 4  ;;  %v718_v30 = vpop.f32.mrb[6].mxu0 }
 0x4ea   :  { %v1169_v32 = vpop.f32.mrb[7].mxu0 }
 0x4eb   :  { %v727_v31 = vadd.f32 %v726_v29, %v725_v26 }
 0x4ed   :  { %v728_v33 = vrot.slane %v727_v31, 2 }
 0x4ef   :  { %v729_v35 = vadd.f32 %v728_v33, %v727_v31 }
 0x4f1   :  { %v730_v36 = vrot.slane %v729_v35, 1 }
 0x4f3   :  { %v731_v37 = vadd.f32 %v730_v36, %v729_v35 }
 0x4f5   :  { %v732_v38 = vmul.f32 0.25, %v731_v37 }
 0x4f7   :  { %v733_v34 = vsub.f32 %v715_v25, %v732_v38 }
 0x4f9   :  { %v734_v39 = vmul.f32 %v733_v34, %v733_v34 }
 0x4fb   :  { %v735_v40 = vsel %vm379_vm1, %v734_v39, 0.0 }
 0x4fc   :  { %v736_v41 = vrot.slane %v735_v40, 4 }
 0x4fe   :  { %v737_v42 = vadd.f32 %v736_v41, %v735_v40 }
 0x500   :  { %v738_v43 = vrot.slane %v737_v42, 2 }
 0x502   :  { %v739_v44 = vadd.f32 %v738_v43, %v737_v42 }
 0x504   :  { %v740_v45 = vrot.slane %v739_v44, 1 }
 0x506   :  { %v741_v46 = vadd.f32 %v740_v45, %v739_v44 }
 0x508   :  { %v742_v47 = vmul.f32 0.25, %v741_v46 }
 0x50a   :  { %v743_v48 = vadd.f32 1e-05, %v742_v47 }
 0x50c   :  { %1293 = vrsqrt.f32 %v743_v48 }
 0x516   :  { %v1294_v49 = vpop.eup %1293 }
 0x517   :  { %v745_v50 = vmul.f32 %v1294_v49, %v733_v34 }
 0x519   :  { %v751_v52 = vmul.f32 %v749_v51, %v745_v50 }
 0x51b   :  { %v757_v17 = vadd.f32 %v755_v16, %v751_v52 }
 0x51d   :  { %v758_v18 = vadd.f32 %v757_v17, %v1562_v55  ;;  %v1072_v55 = vld [vmem:[%s1755_s6 + $0xc] sm:$0xf] }
 0x51f   :  { %v1660_v53 = vmax.f32 %v758_v18, 0.0  ;;  %v1076_v18 = vld [vmem:[%s1755_s6 + $0x10] sm:$0xf] }
 0x521   :  { %774 = vst [vmem:[#allocation3 + $0x10] sm:$0xf] %v1660_v53  ;;  %765 = vrot.lane.b32.xlu0 %v1660_v53, %s1373_s21  ;;  %762 = vrot.lane.b32.xlu1 %v1660_v53, %s1377_s0 }
 0x525   :  { %771 = vrot.lane.b32.xlu0 %v1660_v53, %s1375_s3  ;;  %768 = vrot.lane.b32.xlu1 %v1660_v53, %s1381_s23 }
 0x529   :  { %778 = vrot.lane.b32.xlu0 %v1660_v53, %s1378_s8  ;;  %775 = vrot.lane.b32.xlu1 %v1660_v53, %s1380_s22 }
 0x52d   :  { %784 = vrot.lane.b32.xlu0 %v1660_v53, %s1383_s24  ;;  %781 = vrot.lane.b32.xlu1 %v1660_v53, %s1379_s20 }
 0x531   :  { %884 = vperm.xlu0 %1286, %v1072_v55   ;;  %878 = vperm.xlu1 %1287, %v1071_v54   ;;  %v1075_v55 = vld [vmem:[%s1754_s5 + $0x10] sm:$0xf]  ;;  %v1033_v54 = vld [vmem:[#allocation4] sm:$0x1] }
 0x593   :  { %v766_v56 = vpop.permute.xlu0 %765  ;;  %v763_v57 = vpop.permute.xlu1 %762 }
 0x594   :  { %767 = vst [vmem:[#allocation3 + $0x4] sm:$0xf] %v766_v56  ;;  %764 = vst [vmem:[#allocation3] sm:$0xf] %v763_v57  ;;  %v1019_v56 = vld [vmem:[%s1756_s7] sm:$0xf] }
 0x597   :  { %v772_v58 = vpop.permute.xlu0 %771  ;;  %v769_v59 = vpop.permute.xlu1 %768 }
 0x598   :  { %773 = vst [vmem:[#allocation3 + $0xc] sm:$0xf] %v772_v58  ;;  %770 = vst [vmem:[#allocation3 + $0x8] sm:$0xf] %v769_v59 }
 0x59b   :  { %v779_v60 = vpop.permute.xlu0 %778  ;;  %v776_v61 = vpop.permute.xlu1 %775  ;;  %v787_v62 = vld [vmem:[#allocation3] sm:$0xff] }
 0x59c   :  { %780 = vst [vmem:[#allocation3 + $0x18] sm:$0xf] %v779_v60  ;;  %777 = vst [vmem:[#allocation3 + $0x14] sm:$0xf] %v776_v61  ;;  %v797_v4 = vmul.f32 %v787_v62, %v1590_v1 }
 0x59f   :  { %v785_v63 = vpop.permute.xlu0 %784  ;;  %v782_v0 = vpop.permute.xlu1 %781  ;;  %v788_v3 = vld [vmem:[#allocation3 + $0x8] sm:$0xff] }
 0x5a0   :  { %786 = vst [vmem:[#allocation3 + $0x20] sm:$0xf] %v785_v63  ;;  %783 = vst [vmem:[#allocation3 + $0x1c] sm:$0xf] %v782_v0  ;;  %v798_v21 = vmul.f32 %v788_v3, %v1595_v2 }
 0x5a2   :  { %v802_v22 = vpack.c.bf16 %v798_v21, %v797_v4 }
 0x5a3   :  { %v789_v23 = vld [vmem:[#allocation3 + $0x10] sm:$0xff] }
 0x5a4   :  { %1171 = vmatpush3.bf16.msra.mxu1 %v802_v22  ;;  %v799_v10 = vmul.f32 %v789_v23, %v1602_v6 }
 0x5a5   :  { %1172 = vmatprep.subr.bf16.mxu1 %v1376_v14 }
 0x5a7   :  { %v790_v7 = vld [vmem:[#allocation3 + $0x18] sm:$0xff]  ;;  %v791_v9 = vld [vmem:[#allocation3 + $0x20] sm:$0xf] }
 0x5a8   :  { %v800_v11 = vmul.f32 %v790_v7, %v1608_v8  ;;  %v801_v12 = vmul.f32 %v796_v5, %v791_v9  ;;  %v925_v7 = vld [vmem:[%s1751_s2 + $0x20] sm:$0xf]  ;;  %s1386_s2 = smov [#allocation10]  }
 0x5aa   :  { %v803_v13 = vpack.c.bf16 %v800_v11, %v799_v10  ;;  %v804_v15 = vpack.c.bf16 %v801_v12, %v801_v12 }
 0x5ac   :  { %1173 = vmatpush3.bf16.msra.mxu1 %v803_v13  ;;  %v809_v19 = vsel %vm548_vm3, %v804_v15, 0 }
 0x5ad   :  { %1174 = vmatprep.subr.bf16.mxu1 %v1376_v14 }
 0x5b0   :  { %1175 = vmatpush3.bf16.msra.mxu1 %v809_v19  ;;  %v879_v50 = vpop.permute.xlu1 %878  ;;  %v885_v52 = vpop.permute.xlu0 %884  ;;  %v1073_v19 = vld [vmem:[%s1753_s4 + $0x6] sm:$0x3]  ;;  %s1051_s4 = sshll.u32 %s1386_s2, 4  ;;  %s1052_s4 = int_to_ptr.vmem [resolvable:$true] %s1051_s4 }
 0x5b1   :  { %p1348_p3 = scmp.lt.s32.totalorder %s1052_s4, %s1052_s4 }
 0x5b3   :  { %1177 = vmatmul.mubr.msk.bf16.vlgmr.msra.gmra.mrb[8].mxu1 %vm544_vm4, %v1069_v20 }
 0x686   :  { %v845_v24 = vpop.f32.mrb[8].mxu1 }
 0x687   :  { %v855_v25 = vsel %vm379_vm1, %v845_v24, 0.0  ;;  %v1178_v26 = vpop.f32.mrb[9].mxu1 }
 0x688   :  { %v856_v27 = vrot.slane %v855_v25, 4  ;;  %v848_v29 = vpop.f32.mrb[10].mxu1 }
 0x689   :  { %v1179_v30 = vpop.f32.mrb[11].mxu1 }
 0x68a   :  { %v857_v32 = vadd.f32 %v856_v27, %v855_v25 }
 0x68c   :  { %v858_v31 = vrot.slane %v857_v32, 2 }
 0x68e   :  { %v859_v33 = vadd.f32 %v858_v31, %v857_v32 }
 0x690   :  { %v860_v35 = vrot.slane %v859_v33, 1 }
 0x692   :  { %v861_v36 = vadd.f32 %v860_v35, %v859_v33 }
 0x694   :  { %v862_v37 = vmul.f32 0.25, %v861_v36 }
 0x696   :  { %v863_v38 = vsub.f32 %v845_v24, %v862_v37 }
 0x698   :  { %v864_v34 = vmul.f32 %v863_v38, %v863_v38 }
 0x69a   :  { %v865_v39 = vsel %vm379_vm1, %v864_v34, 0.0 }
 0x69b   :  { %v866_v40 = vrot.slane %v865_v39, 4 }
 0x69d   :  { %v867_v41 = vadd.f32 %v866_v40, %v865_v39 }
 0x69f   :  { %v868_v42 = vrot.slane %v867_v41, 2 }
 0x6a1   :  { %v869_v43 = vadd.f32 %v868_v42, %v867_v41 }
 0x6a3   :  { %v870_v44 = vrot.slane %v869_v43, 1 }
 0x6a5   :  { %v871_v45 = vadd.f32 %v870_v44, %v869_v43 }
 0x6a7   :  { %v872_v46 = vmul.f32 0.25, %v871_v45 }
 0x6a9   :  { %v873_v47 = vadd.f32 1e-05, %v872_v46 }
 0x6ab   :  { %1295 = vrsqrt.f32 %v873_v47 }
 0x6b5   :  { %v1296_v48 = vpop.eup %1295 }
 0x6b6   :  { %v875_v49 = vmul.f32 %v1296_v48, %v863_v38 }
 0x6b8   :  { %v881_v51 = vmul.f32 %v879_v50, %v875_v49 }
 0x6ba   :  { %v887_v16 = vadd.f32 %v885_v52, %v881_v51 }
 0x6bc   :  { %v888_v17 = vmax.f32 %v887_v16, 0.0 }
 0x6be   :  { %903 = vst [vmem:[#allocation3 + $0x10] sm:$0xf] %v888_v17  ;;  %894 = vrot.lane.b32.xlu0 %v888_v17, %s1373_s21  ;;  %891 = vrot.lane.b32.xlu1 %v888_v17, %s1377_s0 }
 0x6c2   :  { %900 = vrot.lane.b32.xlu0 %v888_v17, %s1375_s3  ;;  %897 = vrot.lane.b32.xlu1 %v888_v17, %s1381_s23 }
 0x6c6   :  { %907 = vrot.lane.b32.xlu0 %v888_v17, %s1378_s8  ;;  %904 = vrot.lane.b32.xlu1 %v888_v17, %s1380_s22  ;;  %s1347_s22 = scalar_lea.vmem %s1052_s4, 32 }
 0x6ca   :  { %913 = vrot.lane.b32.xlu0 %v888_v17, %s1383_s24  ;;  %910 = vrot.lane.b32.xlu1 %v888_v17, %s1379_s20  ;;  %s1343_s20 = scalar_lea.vmem %s1052_s4, 16 }
 0x6cb   :  { %p1344_p2 = scmp.ne.s32.totalorder %s1052_s4, %s1343_s20  ;;  %p1349_p4 = scmp.lt.s32.totalorder %s1347_s22, %s1343_s20 }
 0x6cd   :  { %p1350_p5 = por %p1349_p4, %p1348_p3 }
 0x6ce   :  { %1013 = vperm.xlu0 %1286, %v1076_v18   ;;  %1007 = vperm.xlu1 %1287, %v1075_v55  }
 0x6cf   :  { %p1351_p6 = pnand %p1350_p5, %p1344_p2 }
 0x6d2   :  { %1036 = vperm.xlu0 %1286, %v1033_v54   ;;  %1022 = vperm.xlu1 %1287, %v1019_v56   ;;  %v1041_v56 = vsub.s32 0, %v1510_v28 }
 0x730   :  { %v895_v57 = vpop.permute.xlu0 %894  ;;  %v892_v58 = vpop.permute.xlu1 %891 }
 0x731   :  { %896 = vst [vmem:[#allocation3 + $0x4] sm:$0xf] %v895_v57  ;;  %893 = vst [vmem:[#allocation3] sm:$0xf] %v892_v58 }
 0x734   :  { %v901_v59 = vpop.permute.xlu0 %900  ;;  %v898_v60 = vpop.permute.xlu1 %897 }
 0x735   :  { %902 = vst [vmem:[#allocation3 + $0xc] sm:$0xf] %v901_v59  ;;  %899 = vst [vmem:[#allocation3 + $0x8] sm:$0xf] %v898_v60 }
 0x738   :  { %v908_v61 = vpop.permute.xlu0 %907  ;;  %v905_v62 = vpop.permute.xlu1 %904  ;;  %v916_v63 = vld [vmem:[#allocation3] sm:$0xff] }
 0x739   :  { %909 = vst [vmem:[#allocation3 + $0x18] sm:$0xf] %v908_v61  ;;  %906 = vst [vmem:[#allocation3 + $0x14] sm:$0xf] %v905_v62  ;;  %v926_v21 = vmul.f32 %v916_v63, %v1590_v1 }
 0x73c   :  { %v914_v0 = vpop.permute.xlu0 %913  ;;  %v911_v3 = vpop.permute.xlu1 %910  ;;  %v917_v4 = vld [vmem:[#allocation3 + $0x8] sm:$0xff] }
 0x73d   :  { %915 = vst [vmem:[#allocation3 + $0x20] sm:$0xf] %v914_v0  ;;  %912 = vst [vmem:[#allocation3 + $0x1c] sm:$0xf] %v911_v3  ;;  %v927_v22 = vmul.f32 %v917_v4, %v1595_v2 }
 0x73f   :  { %v931_v23 = vpack.c.bf16 %v927_v22, %v926_v21 }
 0x740   :  { %v918_v5 = vld [vmem:[#allocation3 + $0x10] sm:$0xff] }
 0x741   :  { %1181 = vmatpush3.bf16.msra.mxu0 %v931_v23  ;;  %v928_v11 = vmul.f32 %v918_v5, %v1602_v6 }
 0x742   :  { %1182 = vmatprep.subr.bf16.mxu0 %v1376_v14 }
 0x744   :  { %v919_v9 = vld [vmem:[#allocation3 + $0x18] sm:$0xff]  ;;  %v920_v10 = vld [vmem:[#allocation3 + $0x20] sm:$0xf] }
 0x745   :  { %v929_v12 = vmul.f32 %v919_v9, %v1608_v8  ;;  %v930_v13 = vmul.f32 %v925_v7, %v920_v10 }
 0x747   :  { %v932_v15 = vpack.c.bf16 %v929_v12, %v928_v11  ;;  %v933_v1 = vpack.c.bf16 %v930_v13, %v930_v13 }
 0x749   :  { %1183 = vmatpush3.bf16.msra.mxu0 %v932_v15  ;;  %v938_v2 = vsel %vm548_vm3, %v933_v1, 0 }
 0x74a   :  { %1184 = vmatprep.subr.bf16.mxu0 %v1376_v14 }
 0x74d   :  { %1185 = vmatpush3.bf16.msra.mxu0 %v938_v2  ;;  %v1008_v46 = vpop.permute.xlu1 %1007  ;;  %v1014_v48 = vpop.permute.xlu0 %1013 }
 0x750   :  { %1187 = vmatmul.mubr.msk.bf16.vlgmr.msra.gmra.mrb[8].mxu0 %vm544_vm4, %v1073_v19 }
 0x751   :  { %v1023_v52 = vpop.permute.xlu1 %1022  ;;  %v1037_v58 = vpop.permute.xlu0 %1036 }
 0x752   :  { %v1042_v60 = vrot.slane %v1037_v58, %v1041_v56 }
 0x823   :  { %v974_v20 = vpop.f32.mrb[8].mxu0 }
 0x824   :  { %v984_v6 = vsel %vm379_vm1, %v974_v20, 0.0  ;;  %v1188_v24 = vpop.f32.mrb[9].mxu0 }
 0x825   :  { %v985_v8 = vrot.slane %v984_v6, 4  ;;  %v977_v25 = vpop.f32.mrb[10].mxu0 }
 0x826   :  { %v1189_v26 = vpop.f32.mrb[11].mxu0 }
 0x827   :  { %v986_v27 = vadd.f32 %v985_v8, %v984_v6 }
 0x829   :  { %v987_v29 = vrot.slane %v986_v27, 2 }
 0x82b   :  { %v988_v30 = vadd.f32 %v987_v29, %v986_v27 }
 0x82d   :  { %v989_v14 = vrot.slane %v988_v30, 1 }
 0x82f   :  { %v990_v32 = vadd.f32 %v989_v14, %v988_v30 }
 0x831   :  { %v991_v31 = vmul.f32 0.25, %v990_v32 }
 0x833   :  { %v992_v33 = vsub.f32 %v974_v20, %v991_v31 }
 0x835   :  { %v993_v35 = vmul.f32 %v992_v33, %v992_v33 }
 0x837   :  { %v994_v36 = vsel %vm379_vm1, %v993_v35, 0.0 }
 0x838   :  { %v995_v37 = vrot.slane %v994_v36, 4 }
 0x83a   :  { %v996_v38 = vadd.f32 %v995_v37, %v994_v36 }
 0x83c   :  { %v997_v34 = vrot.slane %v996_v38, 2 }
 0x83e   :  { %v998_v39 = vadd.f32 %v997_v34, %v996_v38 }
 0x840   :  { %v999_v40 = vrot.slane %v998_v39, 1 }
 0x842   :  { %v1000_v41 = vadd.f32 %v999_v40, %v998_v39 }
 0x844   :  { %v1001_v42 = vmul.f32 0.25, %v1000_v41 }
 0x846   :  { %v1002_v43 = vadd.f32 1e-05, %v1001_v42 }
 0x848   :  { %1297 = vrsqrt.f32 %v1002_v43 }
 0x852   :  { %v1298_v44 = vpop.eup %1297 }
 0x853   :  { %v1004_v45 = vmul.f32 %v1298_v44, %v992_v33 }
 0x855   :  { %v1010_v47 = vmul.f32 %v1008_v46, %v1004_v45 }
 0x857   :  { %v1016_v49 = vadd.f32 %v1014_v48, %v1010_v47 }
 0x859   :  { %v1017_v50 = vadd.f32 %v1016_v49, %v1660_v53 }
 0x85b   :  { %v1018_v51 = vmax.f32 %v1017_v50, 0.0 }
 0x85d   :  { %v1025_v16 = vmul.f32 %v1023_v52, %v1018_v51 }
 0x85f   :  { %v1026_v17 = vsel %vm379_vm1, %v1025_v16, 0.0 }
 0x860   :  { %v1027_v18 = vrot.slane %v1026_v17, 4 }
 0x862   :  { %v1028_v55 = vadd.f32 %v1027_v18, %v1026_v17 }
 0x864   :  { %v1029_v54 = vrot.slane %v1028_v55, 2 }
 0x866   :  { %v1030_v57 = vadd.f32 %v1029_v54, %v1028_v55 }
 0x868   :  { %v1031_v59 = vrot.slane %v1030_v57, 1 }
 0x86a   :  { %v1032_v61 = vadd.f32 %v1031_v59, %v1030_v57 }
 0x86c   :  { %v1043_v62 = vadd.f32 %v1042_v60, %v1032_v61 }
 0x86e   :  { %1044 = vst [vmem:[#allocation10] sm:$0x1] %v1043_v62 }
 0x86f   :  { %1354 = shalt.err (!%p1351_p6)
}
 0x870   :  { %s1355_s30 = scalar_lea.hbm %s1758_s9, 16 }
 0x871   :  { %p1356_p7 = scmp.ne.s32.totalorder %s1758_s9, %s1355_s30  ;;  %p1359_p8 = scmp.lt.u32.totalorder %s1355_s30, %s1758_s9 }
 0x873   :  { %p1361_p9 = pnand %p1359_p8, %p1356_p7 }
 0x875   :  { %1364 = shalt.err (!%p1361_p9)
}
 0x876   :  { %1054 = dma.vmem_to_hbm [thread:$0]  %s1052_s4, 16, %s1758_s9, [#allocation7]  }
 0x877   :  { %1369 = dma.done.wait [#allocation7], 16  }
 0x878   :  { %1370 = vsyncadd [#allocation7], 4294967280 }
 0x879   :  { %1058 = vsyncpa [#allocation6], 1 }
 0x87a   :  { %1059 = vsyncpa [#allocation9], 1 }
 0x87b   :  { %1060 = vsyncpa [#allocation7], 1 }

</bundles_post_ra>
